<compile_context>
chip_gen: v7x
topology: tpu7x:2x2x1
jax: 0.10.0
libtpu: 0.0.40
codegen_flags: <defaults>
</compile_context>

<pallas_src>
import functools

import jax
import jax.numpy as jnp
from jax.experimental import pallas as pl
from jax.experimental.pallas import tpu as pltpu


def autopad(k, p=None):
    if p is None:
        p = k // 2 if isinstance(k, int) else [x // 2 for x in k]
    return p


def _round_up(x, m):
    return ((x + m - 1) // m) * m


def _pick_tile_h(h_out, w_out, target=512):
    """Largest divisor of h_out such that tile_h * w_out <= target (fallback 1)."""
    best = 1
    for d in range(1, h_out + 1):
        if h_out % d == 0 and d * w_out <= target:
            best = d
    return best


def _conv_bn_act_kernel(x_hbm, w_ref, scale_ref, bias_ref, o_ref,
                        x_buf, acc_ref, dma_sem, *,
                        k, tile_h, w_out, cin_pad, negative_slope, apply_act):
    # x_hbm:     (N, Hp, Wp, Cin_pad)      full padded activation, left in HBM
    # w_ref:     (k, k, Cin_pad, tCout)    weight slab for this Cout tile (VMEM)
    # scale_ref: (1, tCout)                folded BN scale
    # bias_ref:  (1, tCout)                folded BN bias
    # o_ref:     (1, tile_h, W_out, tCout) output tile (lane-dense Cout)
    # x_buf:     (tile_h + k - 1, Wp, Cin_pad) VMEM scratch (haloed row slab)
    # acc_ref:   (tile_h * W_out, tCout)   f32 VMEM accumulator
    n = pl.program_id(0)
    h = pl.program_id(1)
    co = pl.program_id(2)

    # Load the haloed activation slab once per (n, h) tile; co is the innermost
    # ("arbitrary") axis, so the slab stays resident for all Cout tiles.
    @pl.when(co == 0)
    def _():
        row0 = pl.multiple_of(h * tile_h, tile_h)
        cp = pltpu.make_async_copy(
            x_hbm.at[n, pl.ds(row0, tile_h + k - 1), :, :], x_buf, dma_sem)
        cp.start()
        cp.wait()

    acc_ref[...] = jnp.zeros_like(acc_ref)

    # Hot path: k*k shifted-window matmuls over the (padded, lane-aligned) channel dim.
    for kh in range(k):
        for kw in range(k):
            patch = x_buf[kh:kh + tile_h, kw:kw + w_out, :]        # (tile_h, W_out, Cin_pad)
            patch2d = patch.reshape(tile_h * w_out, cin_pad)       # explicit 2-D MXU matmul
            acc_ref[...] += jnp.dot(patch2d, w_ref[kh, kw],
                                    preferred_element_type=jnp.float32)

    # Fused BatchNorm (eval) as per-channel affine, then LeakyReLU(0.1).
    y = acc_ref[...] * scale_ref[...] + bias_ref[...]
    if apply_act:
        y = jnp.where(y >= 0, y, negative_slope * y)
    o_ref[0] = y.reshape(tile_h, w_out, y.shape[-1]).astype(o_ref.dtype)


def conv_bn_leakyrelu(x_nchw, w_hwio, gamma, beta, running_mean, running_var,
                      *, k=3, s=1, p=None, eps=1e-5, negative_slope=0.1,
                      act=True, compute_dtype=jnp.bfloat16,
                      tile_h=None, tile_cout=None):
    """Forward of yolov4 Conv module (eval-mode BN), input NCHW -> output NCHW."""
    assert s == 1, "only stride 1 implemented"  # TODO(synk): stride > 1
    pad = autopad(k, p)

    N, Cin, H, W = x_nchw.shape
    Kh, Kw, Cin_w, Cout = w_hwio.shape
    assert Kh == k and Kw == k and Cin_w == Cin

    Hp, Wp = H + 2 * pad, W + 2 * pad
    H_out = Hp - k + 1
    W_out = Wp - k + 1

    LANE = 128
    cin_pad = _round_up(Cin, LANE)
    cout_pad = _round_up(Cout, LANE)
    if tile_cout is None:
        tile_cout = 256 if cout_pad % 256 == 0 else 128
    assert cout_pad % tile_cout == 0
    if tile_h is None:
        tile_h = _pick_tile_h(H_out, W_out)
    assert H_out % tile_h == 0, "tile_h must divide output height"

    # Glue: layout change, spatial + channel padding, BN fold (cheap, done in JAX).
    x = jnp.transpose(x_nchw, (0, 2, 3, 1))  # NCHW -> NHWC
    x = jnp.pad(x, ((0, 0), (pad, pad), (pad, pad), (0, cin_pad - Cin)))
    x = x.astype(compute_dtype)

    w = jnp.pad(w_hwio, ((0, 0), (0, 0), (0, cin_pad - Cin), (0, cout_pad - Cout)))
    w = w.astype(compute_dtype)

    inv_std = 1.0 / jnp.sqrt(running_var + eps)
    scale = (gamma * inv_std).astype(jnp.float32)
    bias = (beta - running_mean * gamma * inv_std).astype(jnp.float32)
    scale = jnp.pad(scale, (0, cout_pad - Cout)).reshape(1, cout_pad)
    bias = jnp.pad(bias, (0, cout_pad - Cout)).reshape(1, cout_pad)

    # VMEM budget: haloed input slab + f32 acc + double-buffered weight/output slabs.
    itemsize = jnp.dtype(compute_dtype).itemsize
    out_itemsize = jnp.dtype(x_nchw.dtype).itemsize
    vmem_est = (
        (tile_h + k - 1) * Wp * cin_pad * itemsize
        + tile_h * W_out * tile_cout * 4
        + 2 * k * k * cin_pad * tile_cout * itemsize
        + 2 * tile_h * W_out * tile_cout * out_itemsize
        + 4 * 2 * cout_pad * 4
    )
    vmem_limit = int(min(max(2 * vmem_est, 8 << 20), 48 << 20))

    kernel = functools.partial(
        _conv_bn_act_kernel, k=k, tile_h=tile_h, w_out=W_out, cin_pad=cin_pad,
        negative_slope=negative_slope, apply_act=act)

    out_pad = pl.pallas_call(
        kernel,
        out_shape=jax.ShapeDtypeStruct((N, H_out, W_out, cout_pad), x_nchw.dtype),
        grid_spec=pltpu.PrefetchScalarGridSpec(
            num_scalar_prefetch=0,
            grid=(N, H_out // tile_h, cout_pad // tile_cout),
            in_specs=[
                pl.BlockSpec(memory_space=pl.ANY),  # activation stays in HBM
                pl.BlockSpec((k, k, cin_pad, tile_cout), lambda n, h, co: (0, 0, 0, co)),
                pl.BlockSpec((1, tile_cout), lambda n, h, co: (0, co)),
                pl.BlockSpec((1, tile_cout), lambda n, h, co: (0, co)),
            ],
            out_specs=pl.BlockSpec((1, tile_h, W_out, tile_cout),
                                   lambda n, h, co: (n, h, 0, co)),
            scratch_shapes=[
                pltpu.VMEM((tile_h + k - 1, Wp, cin_pad), compute_dtype),
                pltpu.VMEM((tile_h * W_out, tile_cout), jnp.float32),
                pltpu.SemaphoreType.DMA(()),
            ],
        ),
        compiler_params=pltpu.CompilerParams(
            dimension_semantics=("parallel", "parallel", "arbitrary"),
            vmem_limit_bytes=vmem_limit,
        ),
    )(x, w, scale, bias)

    out = out_pad[..., :Cout]
    return jnp.transpose(out, (0, 3, 1, 2))  # NHWC -> NCHW


def _reference(x_nchw, w_hwio, gamma, beta, running_mean, running_var,
               *, k=3, s=1, p=None, eps=1e-5, negative_slope=0.1):
    pad = autopad(k, p)
    y = jax.lax.conv_general_dilated(
        x_nchw, w_hwio,
        window_strides=(s, s),
        padding=((pad, pad), (pad, pad)),
        dimension_numbers=("NCHW", "HWIO", "NCHW"),
    )
    inv_std = 1.0 / jnp.sqrt(running_var + eps)
    scale = (gamma * inv_std)[None, :, None, None]
    bias = (beta - running_mean * gamma * inv_std)[None, :, None, None]
    y = y * scale + bias
    return jnp.where(y >= 0, y, negative_slope * y)


if __name__ == "__main__":
    key = jax.random.PRNGKey(0)
    k_x, k_w, k_g, k_b, k_m, k_v = jax.random.split(key, 6)

    N, C1, C2, H, W = 2, 4, 8, 16, 16
    K = 3

    x = jax.random.normal(k_x, (N, C1, H, W), jnp.float32)
    w = jax.random.normal(k_w, (K, K, C1, C2), jnp.float32) * 0.1   # HWIO
    gamma = jax.random.normal(k_g, (C2,), jnp.float32) * 0.1 + 1.0
    beta = jax.random.normal(k_b, (C2,), jnp.float32) * 0.1
    running_mean = jax.random.normal(k_m, (C2,), jnp.float32) * 0.1
    running_var = jax.random.uniform(k_v, (C2,), jnp.float32, 0.5, 1.5)

    ref = _reference(x, w, gamma, beta, running_mean, running_var, k=K)

    # f32 compute path: tight check of the tiling / DMA / BN / activation machinery.
    out_f32 = conv_bn_leakyrelu(x, w, gamma, beta, running_mean, running_var,
                                k=K, compute_dtype=jnp.float32, tile_h=8)
    out_f32 = jax.block_until_ready(out_f32)
    assert out_f32.shape == (N, C2, H, W)
    assert jnp.allclose(out_f32, ref, atol=1e-4, rtol=1e-4), "f32 path mismatch vs reference"

    # bf16 MXU path (default): looser tolerance for the reduced-precision feeds.
    out_bf16 = conv_bn_leakyrelu(x, w, gamma, beta, running_mean, running_var,
                                 k=K, tile_h=8)
    out_bf16 = jax.block_until_ready(out_bf16)
    assert out_bf16.shape == (N, C2, H, W)
    assert jnp.allclose(out_bf16, ref, atol=5e-2, rtol=5e-2), "bf16 path mismatch vs reference"

    print("KERNEL_OK")
</pallas_src>

<mosaic_0001>
module attributes {stable_mosaic.version = 11 : i64} {
  func.func @_conv_bn_act_kernel(%arg0: i32, %arg1: i32, %arg2: i32, %arg3: memref<2x18x18x128xf32, #tpu.memory_space<any>>, %arg4: memref<3x3x128x128xf32, #tpu.memory_space<vmem>>, %arg5: memref<1x128xf32, #tpu.memory_space<vmem>>, %arg6: memref<1x128xf32, #tpu.memory_space<vmem>>, %arg7: memref<1x8x16x128xf32, #tpu.memory_space<vmem>>, %arg8: memref<10x18x128xf32, #tpu.memory_space<vmem>>, %arg9: memref<128x128xf32, #tpu.memory_space<vmem>>, %arg10: memref<!tpu.dma_semaphore, #tpu.memory_space<semaphore_mem>>) attributes {dimension_semantics = [#tpu.dimension_semantics<parallel>, #tpu.dimension_semantics<parallel>, #tpu.dimension_semantics<arbitrary>], iteration_bounds = array<i64: 2, 2, 1>, scalar_prefetch = 0 : i64, scratch_operands = 3 : i64, tpu.core_type = #tpu.core_type<tc>, window_params = [{}, {transform_indices = @transform_1, window_bounds = array<i64: 3, 3, 128, 128>}, {transform_indices = @transform_2, window_bounds = array<i64: 1, 128>}, {transform_indices = @transform_3, window_bounds = array<i64: 1, 128>}, {transform_indices = @transform_4, window_bounds = array<i64: 1, 8, 16, 128>}]} {
    %c0_i32 = arith.constant 0 : i32
    %0 = arith.cmpi eq, %arg2, %c0_i32 : i32
    %1 = arith.extui %0 : i1 to i32
    %c0_i32_0 = arith.constant 0 : i32
    %2 = arith.cmpi ne, %1, %c0_i32_0 : i32
    scf.if %2 {
      %c8_i32 = arith.constant 8 : i32
      %93 = arith.muli %arg1, %c8_i32 : i32
      %94 = tpu.assume_multiple %93, 8 : i32
      %c0_i32_120 = arith.constant 0 : i32
      %c0_i32_121 = arith.constant 0 : i32
      %95 = tpu.memref_slice %arg3[%arg0, %94, %c0_i32_120, %c0_i32_121] : memref<2x18x18x128xf32, #tpu.memory_space<any>> -> memref<1x10x18x128xf32, #tpu.memory_space<any>>
      %96 = tpu.memref_squeeze %95 : memref<1x10x18x128xf32, #tpu.memory_space<any>> -> memref<10x18x128xf32, #tpu.memory_space<any>>
      tpu.enqueue_dma source(%96 : memref<10x18x128xf32, #tpu.memory_space<any>>) target(%arg8 : memref<10x18x128xf32, #tpu.memory_space<vmem>>) target_semaphore(%arg10 : memref<!tpu.dma_semaphore, #tpu.memory_space<semaphore_mem>>)
      %c0_i32_122 = arith.constant 0 : i32
      %c0_i32_123 = arith.constant 0 : i32
      %97 = tpu.memref_slice %arg3[%arg0, %94, %c0_i32_122, %c0_i32_123] : memref<2x18x18x128xf32, #tpu.memory_space<any>> -> memref<1x10x18x128xf32, #tpu.memory_space<any>>
      %98 = tpu.memref_squeeze %97 : memref<1x10x18x128xf32, #tpu.memory_space<any>> -> memref<10x18x128xf32, #tpu.memory_space<any>>
      tpu.wait_dma2 semaphore(%arg10 : memref<!tpu.dma_semaphore, #tpu.memory_space<semaphore_mem>>) src(%98 : memref<10x18x128xf32, #tpu.memory_space<any>>) dst(%arg8 : memref<10x18x128xf32, #tpu.memory_space<vmem>>)
    } else {
    }
    %cst = arith.constant 0.000000e+00 : f32
    %3 = vector.broadcast %cst : f32 to vector<128x128xf32>
    %c0 = arith.constant 0 : index
    %c0_1 = arith.constant 0 : index
    %4 = vector.load %arg9[%c0, %c0_1] : memref<128x128xf32, #tpu.memory_space<vmem>>, vector<128x128xf32>
    tpu.vector_store %arg9[%c0, %c0_1], %3 {strides = array<i32>} : memref<128x128xf32, #tpu.memory_space<vmem>>, vector<128x128xf32>,
    %c0_2 = arith.constant 0 : index
    %c0_3 = arith.constant 0 : index
    %c0_4 = arith.constant 0 : index
    %5 = vector.load %arg8[%c0_2, %c0_3, %c0_4] : memref<10x18x128xf32, #tpu.memory_space<vmem>>, vector<8x16x128xf32>
    %6 = vector.shape_cast %5 : vector<8x16x128xf32> to vector<128x128xf32>
    %c0_5 = arith.constant 0 : index
    %c0_6 = arith.constant 0 : index
    %7 = vector.load %arg9[%c0_5, %c0_6] : memref<128x128xf32, #tpu.memory_space<vmem>>, vector<128x128xf32>
    %c0_7 = arith.constant 0 : index
    %c0_8 = arith.constant 0 : index
    %c0_9 = arith.constant 0 : index
    %c0_10 = arith.constant 0 : index
    %8 = vector.load %arg4[%c0_7, %c0_8, %c0_9, %c0_10] : memref<3x3x128x128xf32, #tpu.memory_space<vmem>>, vector<1x1x128x128xf32>
    %9 = vector.shape_cast %8 : vector<1x1x128x128xf32> to vector<128x128xf32>
    %cst_11 = arith.constant dense<0.000000e+00> : vector<128x128xf32>
    %10 = tpu.matmul %6, %9, %cst_11 {dimension_numbers = #tpu.dot_dimension_numbers<[1], [0], [0], [1], [0, 0, 1, 1], [], []>} : vector<128x128xf32>, vector<128x128xf32>, vector<128x128xf32> -> vector<128x128xf32>
    %11 = arith.addf %7, %10 : vector<128x128xf32>
    %c0_12 = arith.constant 0 : index
    %c0_13 = arith.constant 0 : index
    %12 = vector.load %arg9[%c0_12, %c0_13] : memref<128x128xf32, #tpu.memory_space<vmem>>, vector<128x128xf32>
    tpu.vector_store %arg9[%c0_12, %c0_13], %11 {strides = array<i32>} : memref<128x128xf32, #tpu.memory_space<vmem>>, vector<128x128xf32>,
    %c0_14 = arith.constant 0 : index
    %c1 = arith.constant 1 : index
    %c0_15 = arith.constant 0 : index
    %13 = vector.load %arg8[%c0_14, %c1, %c0_15] : memref<10x18x128xf32, #tpu.memory_space<vmem>>, vector<8x16x128xf32>
    %14 = vector.shape_cast %13 : vector<8x16x128xf32> to vector<128x128xf32>
    %c0_16 = arith.constant 0 : index
    %c0_17 = arith.constant 0 : index
    %15 = vector.load %arg9[%c0_16, %c0_17] : memref<128x128xf32, #tpu.memory_space<vmem>>, vector<128x128xf32>
    %c0_18 = arith.constant 0 : index
    %c1_19 = arith.constant 1 : index
    %c0_20 = arith.constant 0 : index
    %c0_21 = arith.constant 0 : index
    %16 = vector.load %arg4[%c0_18, %c1_19, %c0_20, %c0_21] : memref<3x3x128x128xf32, #tpu.memory_space<vmem>>, vector<1x1x128x128xf32>
    %17 = vector.shape_cast %16 : vector<1x1x128x128xf32> to vector<128x128xf32>
    %cst_22 = arith.constant dense<0.000000e+00> : vector<128x128xf32>
    %18 = tpu.matmul %14, %17, %cst_22 {dimension_numbers = #tpu.dot_dimension_numbers<[1], [0], [0], [1], [0, 0, 1, 1], [], []>} : vector<128x128xf32>, vector<128x128xf32>, vector<128x128xf32> -> vector<128x128xf32>
    %19 = arith.addf %15, %18 : vector<128x128xf32>
    %c0_23 = arith.constant 0 : index
    %c0_24 = arith.constant 0 : index
    %20 = vector.load %arg9[%c0_23, %c0_24] : memref<128x128xf32, #tpu.memory_space<vmem>>, vector<128x128xf32>
    tpu.vector_store %arg9[%c0_23, %c0_24], %19 {strides = array<i32>} : memref<128x128xf32, #tpu.memory_space<vmem>>, vector<128x128xf32>,
    %c0_25 = arith.constant 0 : index
    %c2 = arith.constant 2 : index
    %c0_26 = arith.constant 0 : index
    %21 = vector.load %arg8[%c0_25, %c2, %c0_26] : memref<10x18x128xf32, #tpu.memory_space<vmem>>, vector<8x16x128xf32>
    %22 = vector.shape_cast %21 : vector<8x16x128xf32> to vector<128x128xf32>
    %c0_27 = arith.constant 0 : index
    %c0_28 = arith.constant 0 : index
    %23 = vector.load %arg9[%c0_27, %c0_28] : memref<128x128xf32, #tpu.memory_space<vmem>>, vector<128x128xf32>
    %c0_29 = arith.constant 0 : index
    %c2_30 = arith.constant 2 : index
    %c0_31 = arith.constant 0 : index
    %c0_32 = arith.constant 0 : index
    %24 = vector.load %arg4[%c0_29, %c2_30, %c0_31, %c0_32] : memref<3x3x128x128xf32, #tpu.memory_space<vmem>>, vector<1x1x128x128xf32>
    %25 = vector.shape_cast %24 : vector<1x1x128x128xf32> to vector<128x128xf32>
    %cst_33 = arith.constant dense<0.000000e+00> : vector<128x128xf32>
    %26 = tpu.matmul %22, %25, %cst_33 {dimension_numbers = #tpu.dot_dimension_numbers<[1], [0], [0], [1], [0, 0, 1, 1], [], []>} : vector<128x128xf32>, vector<128x128xf32>, vector<128x128xf32> -> vector<128x128xf32>
    %27 = arith.addf %23, %26 : vector<128x128xf32>
    %c0_34 = arith.constant 0 : index
    %c0_35 = arith.constant 0 : index
    %28 = vector.load %arg9[%c0_34, %c0_35] : memref<128x128xf32, #tpu.memory_space<vmem>>, vector<128x128xf32>
    tpu.vector_store %arg9[%c0_34, %c0_35], %27 {strides = array<i32>} : memref<128x128xf32, #tpu.memory_space<vmem>>, vector<128x128xf32>,
    %c1_36 = arith.constant 1 : index
    %c0_37 = arith.constant 0 : index
    %c0_38 = arith.constant 0 : index
    %29 = vector.load %arg8[%c1_36, %c0_37, %c0_38] : memref<10x18x128xf32, #tpu.memory_space<vmem>>, vector<8x16x128xf32>
    %30 = vector.shape_cast %29 : vector<8x16x128xf32> to vector<128x128xf32>
    %c0_39 = arith.constant 0 : index
    %c0_40 = arith.constant 0 : index
    %31 = vector.load %arg9[%c0_39, %c0_40] : memref<128x128xf32, #tpu.memory_space<vmem>>, vector<128x128xf32>
    %c1_41 = arith.constant 1 : index
    %c0_42 = arith.constant 0 : index
    %c0_43 = arith.constant 0 : index
    %c0_44 = arith.constant 0 : index
    %32 = vector.load %arg4[%c1_41, %c0_42, %c0_43, %c0_44] : memref<3x3x128x128xf32, #tpu.memory_space<vmem>>, vector<1x1x128x128xf32>
    %33 = vector.shape_cast %32 : vector<1x1x128x128xf32> to vector<128x128xf32>
    %cst_45 = arith.constant dense<0.000000e+00> : vector<128x128xf32>
    %34 = tpu.matmul %30, %33, %cst_45 {dimension_numbers = #tpu.dot_dimension_numbers<[1], [0], [0], [1], [0, 0, 1, 1], [], []>} : vector<128x128xf32>, vector<128x128xf32>, vector<128x128xf32> -> vector<128x128xf32>
    %35 = arith.addf %31, %34 : vector<128x128xf32>
    %c0_46 = arith.constant 0 : index
    %c0_47 = arith.constant 0 : index
    %36 = vector.load %arg9[%c0_46, %c0_47] : memref<128x128xf32, #tpu.memory_space<vmem>>, vector<128x128xf32>
    tpu.vector_store %arg9[%c0_46, %c0_47], %35 {strides = array<i32>} : memref<128x128xf32, #tpu.memory_space<vmem>>, vector<128x128xf32>,
    %c1_48 = arith.constant 1 : index
    %c1_49 = arith.constant 1 : index
    %c0_50 = arith.constant 0 : index
    %37 = vector.load %arg8[%c1_48, %c1_49, %c0_50] : memref<10x18x128xf32, #tpu.memory_space<vmem>>, vector<8x16x128xf32>
    %38 = vector.shape_cast %37 : vector<8x16x128xf32> to vector<128x128xf32>
    %c0_51 = arith.constant 0 : index
    %c0_52 = arith.constant 0 : index
    %39 = vector.load %arg9[%c0_51, %c0_52] : memref<128x128xf32, #tpu.memory_space<vmem>>, vector<128x128xf32>
    %c1_53 = arith.constant 1 : index
    %c1_54 = arith.constant 1 : index
    %c0_55 = arith.constant 0 : index
    %c0_56 = arith.constant 0 : index
    %40 = vector.load %arg4[%c1_53, %c1_54, %c0_55, %c0_56] : memref<3x3x128x128xf32, #tpu.memory_space<vmem>>, vector<1x1x128x128xf32>
    %41 = vector.shape_cast %40 : vector<1x1x128x128xf32> to vector<128x128xf32>
    %cst_57 = arith.constant dense<0.000000e+00> : vector<128x128xf32>
    %42 = tpu.matmul %38, %41, %cst_57 {dimension_numbers = #tpu.dot_dimension_numbers<[1], [0], [0], [1], [0, 0, 1, 1], [], []>} : vector<128x128xf32>, vector<128x128xf32>, vector<128x128xf32> -> vector<128x128xf32>
    %43 = arith.addf %39, %42 : vector<128x128xf32>
    %c0_58 = arith.constant 0 : index
    %c0_59 = arith.constant 0 : index
    %44 = vector.load %arg9[%c0_58, %c0_59] : memref<128x128xf32, #tpu.memory_space<vmem>>, vector<128x128xf32>
    tpu.vector_store %arg9[%c0_58, %c0_59], %43 {strides = array<i32>} : memref<128x128xf32, #tpu.memory_space<vmem>>, vector<128x128xf32>,
    %c1_60 = arith.constant 1 : index
    %c2_61 = arith.constant 2 : index
    %c0_62 = arith.constant 0 : index
    %45 = vector.load %arg8[%c1_60, %c2_61, %c0_62] : memref<10x18x128xf32, #tpu.memory_space<vmem>>, vector<8x16x128xf32>
    %46 = vector.shape_cast %45 : vector<8x16x128xf32> to vector<128x128xf32>
    %c0_63 = arith.constant 0 : index
    %c0_64 = arith.constant 0 : index
    %47 = vector.load %arg9[%c0_63, %c0_64] : memref<128x128xf32, #tpu.memory_space<vmem>>, vector<128x128xf32>
    %c1_65 = arith.constant 1 : index
    %c2_66 = arith.constant 2 : index
    %c0_67 = arith.constant 0 : index
    %c0_68 = arith.constant 0 : index
    %48 = vector.load %arg4[%c1_65, %c2_66, %c0_67, %c0_68] : memref<3x3x128x128xf32, #tpu.memory_space<vmem>>, vector<1x1x128x128xf32>
    %49 = vector.shape_cast %48 : vector<1x1x128x128xf32> to vector<128x128xf32>
    %cst_69 = arith.constant dense<0.000000e+00> : vector<128x128xf32>
    %50 = tpu.matmul %46, %49, %cst_69 {dimension_numbers = #tpu.dot_dimension_numbers<[1], [0], [0], [1], [0, 0, 1, 1], [], []>} : vector<128x128xf32>, vector<128x128xf32>, vector<128x128xf32> -> vector<128x128xf32>
    %51 = arith.addf %47, %50 : vector<128x128xf32>
    %c0_70 = arith.constant 0 : index
    %c0_71 = arith.constant 0 : index
    %52 = vector.load %arg9[%c0_70, %c0_71] : memref<128x128xf32, #tpu.memory_space<vmem>>, vector<128x128xf32>
    tpu.vector_store %arg9[%c0_70, %c0_71], %51 {strides = array<i32>} : memref<128x128xf32, #tpu.memory_space<vmem>>, vector<128x128xf32>,
    %c2_72 = arith.constant 2 : index
    %c0_73 = arith.constant 0 : index
    %c0_74 = arith.constant 0 : index
    %53 = vector.load %arg8[%c2_72, %c0_73, %c0_74] : memref<10x18x128xf32, #tpu.memory_space<vmem>>, vector<8x16x128xf32>
    %54 = vector.shape_cast %53 : vector<8x16x128xf32> to vector<128x128xf32>
    %c0_75 = arith.constant 0 : index
    %c0_76 = arith.constant 0 : index
    %55 = vector.load %arg9[%c0_75, %c0_76] : memref<128x128xf32, #tpu.memory_space<vmem>>, vector<128x128xf32>
    %c2_77 = arith.constant 2 : index
    %c0_78 = arith.constant 0 : index
    %c0_79 = arith.constant 0 : index
    %c0_80 = arith.constant 0 : index
    %56 = vector.load %arg4[%c2_77, %c0_78, %c0_79, %c0_80] : memref<3x3x128x128xf32, #tpu.memory_space<vmem>>, vector<1x1x128x128xf32>
    %57 = vector.shape_cast %56 : vector<1x1x128x128xf32> to vector<128x128xf32>
    %cst_81 = arith.constant dense<0.000000e+00> : vector<128x128xf32>
    %58 = tpu.matmul %54, %57, %cst_81 {dimension_numbers = #tpu.dot_dimension_numbers<[1], [0], [0], [1], [0, 0, 1, 1], [], []>} : vector<128x128xf32>, vector<128x128xf32>, vector<128x128xf32> -> vector<128x128xf32>
    %59 = arith.addf %55, %58 : vector<128x128xf32>
    %c0_82 = arith.constant 0 : index
    %c0_83 = arith.constant 0 : index
    %60 = vector.load %arg9[%c0_82, %c0_83] : memref<128x128xf32, #tpu.memory_space<vmem>>, vector<128x128xf32>
    tpu.vector_store %arg9[%c0_82, %c0_83], %59 {strides = array<i32>} : memref<128x128xf32, #tpu.memory_space<vmem>>, vector<128x128xf32>,
    %c2_84 = arith.constant 2 : index
    %c1_85 = arith.constant 1 : index
    %c0_86 = arith.constant 0 : index
    %61 = vector.load %arg8[%c2_84, %c1_85, %c0_86] : memref<10x18x128xf32, #tpu.memory_space<vmem>>, vector<8x16x128xf32>
    %62 = vector.shape_cast %61 : vector<8x16x128xf32> to vector<128x128xf32>
    %c0_87 = arith.constant 0 : index
    %c0_88 = arith.constant 0 : index
    %63 = vector.load %arg9[%c0_87, %c0_88] : memref<128x128xf32, #tpu.memory_space<vmem>>, vector<128x128xf32>
    %c2_89 = arith.constant 2 : index
    %c1_90 = arith.constant 1 : index
    %c0_91 = arith.constant 0 : index
    %c0_92 = arith.constant 0 : index
    %64 = vector.load %arg4[%c2_89, %c1_90, %c0_91, %c0_92] : memref<3x3x128x128xf32, #tpu.memory_space<vmem>>, vector<1x1x128x128xf32>
    %65 = vector.shape_cast %64 : vector<1x1x128x128xf32> to vector<128x128xf32>
    %cst_93 = arith.constant dense<0.000000e+00> : vector<128x128xf32>
    %66 = tpu.matmul %62, %65, %cst_93 {dimension_numbers = #tpu.dot_dimension_numbers<[1], [0], [0], [1], [0, 0, 1, 1], [], []>} : vector<128x128xf32>, vector<128x128xf32>, vector<128x128xf32> -> vector<128x128xf32>
    %67 = arith.addf %63, %66 : vector<128x128xf32>
    %c0_94 = arith.constant 0 : index
    %c0_95 = arith.constant 0 : index
    %68 = vector.load %arg9[%c0_94, %c0_95] : memref<128x128xf32, #tpu.memory_space<vmem>>, vector<128x128xf32>
    tpu.vector_store %arg9[%c0_94, %c0_95], %67 {strides = array<i32>} : memref<128x128xf32, #tpu.memory_space<vmem>>, vector<128x128xf32>,
    %c2_96 = arith.constant 2 : index
    %c2_97 = arith.constant 2 : index
    %c0_98 = arith.constant 0 : index
    %69 = vector.load %arg8[%c2_96, %c2_97, %c0_98] : memref<10x18x128xf32, #tpu.memory_space<vmem>>, vector<8x16x128xf32>
    %70 = vector.shape_cast %69 : vector<8x16x128xf32> to vector<128x128xf32>
    %c0_99 = arith.constant 0 : index
    %c0_100 = arith.constant 0 : index
    %71 = vector.load %arg9[%c0_99, %c0_100] : memref<128x128xf32, #tpu.memory_space<vmem>>, vector<128x128xf32>
    %c2_101 = arith.constant 2 : index
    %c2_102 = arith.constant 2 : index
    %c0_103 = arith.constant 0 : index
    %c0_104 = arith.constant 0 : index
    %72 = vector.load %arg4[%c2_101, %c2_102, %c0_103, %c0_104] : memref<3x3x128x128xf32, #tpu.memory_space<vmem>>, vector<1x1x128x128xf32>
    %73 = vector.shape_cast %72 : vector<1x1x128x128xf32> to vector<128x128xf32>
    %cst_105 = arith.constant dense<0.000000e+00> : vector<128x128xf32>
    %74 = tpu.matmul %70, %73, %cst_105 {dimension_numbers = #tpu.dot_dimension_numbers<[1], [0], [0], [1], [0, 0, 1, 1], [], []>} : vector<128x128xf32>, vector<128x128xf32>, vector<128x128xf32> -> vector<128x128xf32>
    %75 = arith.addf %71, %74 : vector<128x128xf32>
    %c0_106 = arith.constant 0 : index
    %c0_107 = arith.constant 0 : index
    %76 = vector.load %arg9[%c0_106, %c0_107] : memref<128x128xf32, #tpu.memory_space<vmem>>, vector<128x128xf32>
    tpu.vector_store %arg9[%c0_106, %c0_107], %75 {strides = array<i32>} : memref<128x128xf32, #tpu.memory_space<vmem>>, vector<128x128xf32>,
    %c0_108 = arith.constant 0 : index
    %c0_109 = arith.constant 0 : index
    %77 = vector.load %arg9[%c0_108, %c0_109] : memref<128x128xf32, #tpu.memory_space<vmem>>, vector<128x128xf32>
    %c0_110 = arith.constant 0 : index
    %c0_111 = arith.constant 0 : index
    %78 = vector.load %arg5[%c0_110, %c0_111] : memref<1x128xf32, #tpu.memory_space<vmem>>, vector<1x128xf32>
    %79 = vector.broadcast %78 : vector<1x128xf32> to vector<128x128xf32>
    %80 = arith.mulf %77, %79 : vector<128x128xf32>
    %c0_112 = arith.constant 0 : index
    %c0_113 = arith.constant 0 : index
    %81 = vector.load %arg6[%c0_112, %c0_113] : memref<1x128xf32, #tpu.memory_space<vmem>>, vector<1x128xf32>
    %82 = vector.broadcast %81 : vector<1x128xf32> to vector<128x128xf32>
    %83 = arith.addf %80, %82 : vector<128x128xf32>
    %cst_114 = arith.constant 0.000000e+00 : f32
    %84 = vector.broadcast %cst_114 : f32 to vector<128x128xf32>
    %85 = arith.cmpf oge, %83, %84 : vector<128x128xf32>
    %cst_115 = arith.constant 1.000000e-01 : f32
    %86 = vector.broadcast %cst_115 : f32 to vector<128x128xf32>
    %87 = arith.mulf %86, %83 : vector<128x128xf32>
    %88 = arith.select %85, %83, %87 : vector<128x128xi1>, vector<128x128xf32>
    %89 = vector.shape_cast %88 : vector<128x128xf32> to vector<8x16x128xf32>
    %c0_116 = arith.constant 0 : index
    %c0_117 = arith.constant 0 : index
    %c0_118 = arith.constant 0 : index
    %c0_119 = arith.constant 0 : index
    %90 = vector.load %arg7[%c0_116, %c0_117, %c0_118, %c0_119] : memref<1x8x16x128xf32, #tpu.memory_space<vmem>>, vector<1x8x16x128xf32>
    %91 = vector.shape_cast %90 : vector<1x8x16x128xf32> to vector<8x16x128xf32>
    %92 = vector.shape_cast %89 : vector<8x16x128xf32> to vector<1x8x16x128xf32>
    tpu.vector_store %arg7[%c0_116, %c0_117, %c0_118, %c0_119], %92 {strides = array<i32>} : memref<1x8x16x128xf32, #tpu.memory_space<vmem>>, vector<1x8x16x128xf32>,
    return
  }
  func.func @transform_1(%arg0: i32, %arg1: i32, %arg2: i32) -> (i32, i32, i32, i32) {
    %c0_i32 = arith.constant 0 : i32
    %c0_i32_0 = arith.constant 0 : i32
    %c0_i32_1 = arith.constant 0 : i32
    %c0_i32_2 = arith.constant 0 : i32
    return %c0_i32, %c0_i32_0, %c0_i32_1, %arg2 : i32, i32, i32, i32
  }
  func.func @transform_2(%arg0: i32, %arg1: i32, %arg2: i32) -> (i32, i32) {
    %c0_i32 = arith.constant 0 : i32
    %c0_i32_0 = arith.constant 0 : i32
    return %c0_i32, %arg2 : i32, i32
  }
  func.func @transform_3(%arg0: i32, %arg1: i32, %arg2: i32) -> (i32, i32) {
    %c0_i32 = arith.constant 0 : i32
    %c0_i32_0 = arith.constant 0 : i32
    return %c0_i32, %arg2 : i32, i32
  }
  func.func @transform_4(%arg0: i32, %arg1: i32, %arg2: i32) -> (i32, i32, i32, i32) {
    %c0_i32 = arith.constant 0 : i32
    %c0_i32_0 = arith.constant 0 : i32
    return %arg0, %arg1, %c0_i32, %arg2 : i32, i32, i32, i32
  }
}

</mosaic_0001>

<bundles_post_ra>
// kernel: tpu_custom_call.1
= control target key start
LH: loop header
LB: loop body
LE: loop exit
PB: predicated region body
PF: predicated region fallthrough
CT: control target
= control target key end

     0   :  { %9 = vsyncpa [#allocation6], 0  ;;  %s5193_s0 = inlined_call_operand.vmem [shape: f32[2,18,18,128], index: 0, kind: input, shape index: {}]   ;;  %s5194_s1 = inlined_call_operand.vmem [shape: f32[3,3,128,128], index: 1, kind: input, shape index: {}]   ;;  %s5195_s2 = inlined_call_operand.vmem [shape: f32[1,128], index: 2, kind: input, shape index: {}]   ;;  %s5196_s3 = inlined_call_operand.vmem [shape: f32[1,128], index: 3, kind: input, shape index: {}]   ;;  %s5197_s4 = inlined_call_operand.hbm [shape: f32[2,16,16,128], index: 4, kind: output, shape index: {}]  }
   0x1   :  { %11 = vsyncpa [#allocation6 + $0x1], 0  ;;  %s4268_s15 = smov 0   ;;  %s4270_s16 = smov 0  }
   0x2   :  { %s4272_s17 = smov 0   ;;  %s4274_s18 = smov 0  }
   0x3   :  { %s4276_s19 = smov 0   ;;  %s4278_s20 = smov 0  }
   0x4   :  { %s4280_s21 = smov 0   ;;  %s4282_s22 = smov 0  }
   0x5 LB: > { %s2686_s23 = sadd.s32 4294967295, %s4238_s22   ;;  %s2687_s24 = sadd.s32 4294967294, %s4238_s22   ;;  %s4238_s22 = sphi %s4282_s22, %s17_s22   ;;  %s4234_s21 = sphi %s4280_s21, %s5206_s21   ;;  %s4230_s20 = sphi %s4278_s20, %s5205_s20   ;;  %s4226_s19 = sphi %s4276_s19, %s5204_s19   ;;  %s4222_s18 = sphi %s4274_s18, %s5203_s18   ;;  %s4218_s17 = sphi %s4272_s17, %s5202_s17   ;;  %s4214_s16 = sphi %s4270_s16, %s5201_s16   ;;  %s4210_s15 = sphi %s4268_s15, %s5200_s15  }
   0x6   : > { %s32_s25 = sadd.s32 1, %s4230_s20  ;;  %s36_s26 = sadd.s32 1, %s4234_s21 }
   0x7   : > { %p34_p0 = scmp.ge.s32.totalorder %s32_s25, 2  ;;  %p135_p1 = scmp.ne.s32.totalorder %s4218_s17, %s4214_s16 }
   0x8   : > { %p136_p2 = scmp.eq.s32.totalorder %s2686_s23, 3  ;;  %p141_p5 = scmp.ne.s32.totalorder %s4214_s16, %s4210_s15 }
   0x9   : > { %s5208_s25 = smov (%p34_p0, %s32_s25), 0  ;;  %s5210_s26 = smov (!%p34_p0, %s36_s26), %s4234_s21 }
   0xa   : > { %s119_s27 = ssub.s32 %s4230_s20, %s5208_s25  ;;  %p4319_p3 = por %p136_p2, %p135_p1 }
   0xb   : > { %p38_p4 = scmp.ge.s32.totalorder %s5210_s26, 2  ;;  %p142_p6 = scmp.eq.s32.totalorder %s2687_s24, 3 }
   0xc   : > { %p2692_p7 = scmp.ge.s32.totalorder %s4238_s22, 1  ;;  %p179_p9 = scmp.lt.s32.totalorder %s4238_s22, 5 }
   0xd   : > { %s5212_s26 = smov (%p38_p4, %s5210_s26), 0  ;;  %p4328_p8 = por %p142_p6, %p141_p5 }
   0xe   : > { %s118_s30 = ssub.s32 %s4234_s21, %s5212_s26  ;;  %s125_s5 = sadd.s32 1, %s4218_s17 }
   0xf   : > { %s120_s6 = sor.u32 %s119_s27, %s118_s30  ;;  %p180_p10 = pnand %p2692_p7, %p179_p9 }
  0x10   : > { %p123_p11 = scmp.eq.s32.totalorder %s120_s6, 0  ;;  %s205_s8 = sand.u32 (!%p180_p10), 1, %s4214_s16  }
  0x11   : > { %183 = sbr.rel (%p180_p10) target bundleno = 463 (0x1cf), region = 32  ;;  %s4343_s10 = sshll.u32 (!%p180_p10), %s205_s8, 7 }
  0x12   : > { %s4337_s7 = scalar_select %p123_p11, %s4218_s17, %s125_s5  }
  0x13   : > { %s2695_s9 = smul.u32 (!%p180_p10), 192, %s4222_s18  ;;  %s4382_s24 = scalar_lea.vmem (!%p180_p10), [#allocation5], %s4343_s10 }
  0x14   : > { %s225_s11 = smul.u32 (!%p180_p10), 432, %s4226_s19 }
  0x16   : > { %s226_s12 = sadd.s32 (!%p180_p10), %s2695_s9, %s225_s11 }
  0x17   : > { %s4349_s23 = scalar_lea.vmem (!%p180_p10), %s5193_s0, %s226_s12 }
  0x18   : > { %v283_v0 = vld [vmem:[%s4349_s23] sm:$0xff]  ;;  %v285_v1 = vld [vmem:[%s4349_s23 + $0x8] sm:$0xff]  ;;  %v287_v2 = vld [vmem:[%s4349_s23 + $0x18] sm:$0xff] }
  0x19   : > { %284 = vst [vmem:[#allocation2] sm:$0xff] %v283_v0  ;;  %286 = vst [vmem:[#allocation2 + $0x8] sm:$0xff] %v285_v1  ;;  %v289_v3 = vld [vmem:[%s4349_s23 + $0x20] sm:$0xff]  ;;  %v291_v4 = vld [vmem:[%s4349_s23 + $0x30] sm:$0xff] }
  0x1a   : > { %288 = vst [vmem:[#allocation2 + $0x18] sm:$0xff] %v287_v2  ;;  %v293_v5 = vld [vmem:[%s4349_s23 + $0x38] sm:$0xff]  ;;  %290 = vst [vmem:[#allocation2 + $0x20] sm:$0xff] %v289_v3  ;;  %v295_v6 = vld [vmem:[%s4349_s23 + $0x48] sm:$0xff] }
  0x1b   : > { %292 = vst [vmem:[#allocation2 + $0x30] sm:$0xff] %v291_v4  ;;  %294 = vst [vmem:[#allocation2 + $0x38] sm:$0xff] %v293_v5  ;;  %v297_v7 = vld [vmem:[%s4349_s23 + $0x50] sm:$0xff]  ;;  %v299_v8 = vld [vmem:[%s4349_s23 + $0x60] sm:$0xff] }
  0x1c   : > { %296 = vst [vmem:[#allocation2 + $0x48] sm:$0xff] %v295_v6  ;;  %298 = vst [vmem:[#allocation2 + $0x50] sm:$0xff] %v297_v7  ;;  %v301_v9 = vld [vmem:[%s4349_s23 + $0x68] sm:$0xff]  ;;  %v303_v10 = vld [vmem:[%s4349_s23 + $0x78] sm:$0xff] }
  0x1d   : > { %300 = vst [vmem:[#allocation2 + $0x60] sm:$0xff] %v299_v8  ;;  %v305_v11 = vld [vmem:[%s4349_s23 + $0x80] sm:$0xff]  ;;  %302 = vst [vmem:[#allocation2 + $0x68] sm:$0xff] %v301_v9  ;;  %v307_v12 = vld [vmem:[%s4349_s23 + $0x90] sm:$0xff] }
  0x1e   : > { %304 = vst [vmem:[#allocation2 + $0x78] sm:$0xff] %v303_v10  ;;  %306 = vst [vmem:[#allocation2 + $0x80] sm:$0xff] %v305_v11  ;;  %v309_v13 = vld [vmem:[%s4349_s23 + $0x98] sm:$0xff]  ;;  %v311_v14 = vld [vmem:[%s4349_s23 + $0xa8] sm:$0xff] }
  0x1f   : > { %308 = vst [vmem:[#allocation2 + $0x90] sm:$0xff] %v307_v12  ;;  %310 = vst [vmem:[#allocation2 + $0x98] sm:$0xff] %v309_v13  ;;  %v313_v15 = vld [vmem:[%s4349_s23 + $0xb0] sm:$0xff]  ;;  %v315_v16 = vld [vmem:[%s4349_s23 + $0xc0] sm:$0xff] }
  0x20   : > { %312 = vst [vmem:[#allocation2 + $0xa8] sm:$0xff] %v311_v14  ;;  %v317_v17 = vld [vmem:[%s4349_s23 + $0xc8] sm:$0xff]  ;;  %314 = vst [vmem:[#allocation2 + $0xb0] sm:$0xff] %v313_v15  ;;  %v319_v18 = vld [vmem:[%s4349_s23 + $0xd8] sm:$0xff] }
  0x21   : > { %316 = vst [vmem:[#allocation2 + $0xc0] sm:$0xff] %v315_v16  ;;  %318 = vst [vmem:[#allocation2 + $0xc8] sm:$0xff] %v317_v17  ;;  %v321_v19 = vld [vmem:[%s4349_s23 + $0xe0] sm:$0xff]  ;;  %v2696_v20 = vld [vmem:[%s4349_s23 + $0x10] sm:$0x3] }
  0x22   : > { %320 = vst [vmem:[#allocation2 + $0xd8] sm:$0xff] %v319_v18  ;;  %322 = vst [vmem:[#allocation2 + $0xe0] sm:$0xff] %v321_v19  ;;  %v2697_v21 = vld [vmem:[%s4349_s23 + $0x28] sm:$0x3]  ;;  %v2698_v22 = vld [vmem:[%s4349_s23 + $0x40] sm:$0x3] }
  0x23   : > { %333 = vst [vmem:[#allocation2 + $0x10] sm:$0x3] %v2696_v20  ;;  %v2699_v23 = vld [vmem:[%s4349_s23 + $0x58] sm:$0x3]  ;;  %335 = vst [vmem:[#allocation2 + $0x28] sm:$0x3] %v2697_v21 }
  0x24   : > { %337 = vst [vmem:[#allocation2 + $0x40] sm:$0x3] %v2698_v22  ;;  %339 = vst [vmem:[#allocation2 + $0x58] sm:$0x3] %v2699_v23  ;;  %v2700_v24 = vld [vmem:[%s4349_s23 + $0x70] sm:$0x3] }
  0x25   : > { %v2701_v25 = vld [vmem:[%s4349_s23 + $0x88] sm:$0x3]  ;;  %v2702_v26 = vld [vmem:[%s4349_s23 + $0xa0] sm:$0x3]  ;;  %341 = vst [vmem:[#allocation2 + $0x70] sm:$0x3] %v2700_v24 }
  0x26   : > { %343 = vst [vmem:[#allocation2 + $0x88] sm:$0x3] %v2701_v25  ;;  %345 = vst [vmem:[#allocation2 + $0xa0] sm:$0x3] %v2702_v26  ;;  %v2703_v27 = vld [vmem:[%s4349_s23 + $0xb8] sm:$0x3] }
  0x27   : > { %v2704_v28 = vld [vmem:[%s4349_s23 + $0xd0] sm:$0x3]  ;;  %v2705_v29 = vld [vmem:[%s4349_s23 + $0xe8] sm:$0x3]  ;;  %347 = vst [vmem:[#allocation2 + $0xb8] sm:$0x3] %v2703_v27 }
  0x28   : > { %349 = vst [vmem:[#allocation2 + $0xd0] sm:$0x3] %v2704_v28  ;;  %351 = vst [vmem:[#allocation2 + $0xe8] sm:$0x3] %v2705_v29 }
  0x29   : > { %355 = vsyncadd [#allocation4], 2880 }
  0x2a   : > { %4202 = dma.done.wait [#allocation4], 2880 }
  0x2b   : > { %4203 = vsyncadd [#allocation4], 4294964416  ;;  %v408_v30 = vld [vmem:[%s5194_s1] sm:$0xff]  ;;  %v409_v31 = vld [vmem:[%s5194_s1 + $0x8] sm:$0xff]  ;;  %s2844_s12 = sshll.u32 %s4222_s18, 4  ;;  %s2839_s13 = sshll.u32 %s4226_s19, 5 }
  0x2c   : > { %v2754_v32 = vld [vmem:[%s5194_s1 + $0x200] sm:$0xff]  ;;  %v3637_v33 = vpack.c.bf16 %v409_v31, %v408_v30  ;;  %v2755_v34 = vld [vmem:[%s5194_s1 + $0x208] sm:$0xff]  ;;  %v410_v35 = vld [vmem:[%s5194_s1 + $0x10] sm:$0xff]  ;;  %s2552_s18 = sadd.s32 %s2844_s12, %s2839_s13  ;;  %s2555_s10 = sshll.u32 %s4382_s24, 4  ;;  %s5134_s10 = int_to_ptr.vmem [resolvable:$true] %s2555_s10 }
  0x2d   : > { %v411_v36 = vld [vmem:[%s5194_s1 + $0x18] sm:$0xff]  ;;  %v3765_v37 = vpack.c.bf16 %v2755_v34, %v2754_v32  ;;  %v2756_v39 = vld [vmem:[%s5194_s1 + $0x210] sm:$0xff]  ;;  %v412_v41 = vld [vmem:[%s5194_s1 + $0x20] sm:$0xff]  ;;  %s2840_s19 = sshll.u32 %s2552_s18, 7  ;;  %s5141_s30 = scalar_lea.sflag [#allocation6], %s205_s8 }
  0x2e   : > { %v3641_v38 = vpack.c.bf16 %v411_v36, %v410_v35  ;;  %v2757_v40 = vld [vmem:[%s5194_s1 + $0x218] sm:$0xff]  ;;  %3638 = vmatprep.subr.bf16.mxu1 %v3637_v33  ;;  %v413_v43 = vld [vmem:[%s5194_s1 + $0x28] sm:$0xff]  ;;  %v2758_v44 = vld [vmem:[%s5194_s1 + $0x220] sm:$0xff]  ;;  %s5132_s27 = scalar_lea.hbm %s5197_s4, %s2840_s19  ;;  %s4142_s5 = scalar_lea.vmem %s5134_s10, 2048 }
  0x2f   : > { %v3769_v42 = vpack.c.bf16 %v2757_v40, %v2756_v39  ;;  %v2759_v45 = vld [vmem:[%s5194_s1 + $0x228] sm:$0xff]  ;;  %3766 = vmatprep.subr.bf16.mxu0 %v3765_v37  ;;  %3640 = vmatpush3.bf16.msra.mxu1 %v3637_v33  ;;  %v3645_v46 = vpack.c.bf16 %v413_v43, %v412_v41  ;;  %v414_v48 = vld [vmem:[%s5194_s1 + $0x30] sm:$0xff]  ;;  %v415_v49 = vld [vmem:[%s5194_s1 + $0x38] sm:$0xff]  ;;  %p4143_p12 = scmp.ne.s32.totalorder %s5134_s10, %s4142_s5  ;;  %s4240_s6 = smov [#allocation5]  }
  0x30   : > { %3768 = vmatpush3.bf16.msra.mxu0 %v3765_v37  ;;  %3642 = vmatprep.subr.bf16.mxu1 %v3641_v38  ;;  %v3773_v47 = vpack.c.bf16 %v2759_v45, %v2758_v44  ;;  %v2760_v50 = vld [vmem:[%s5194_s1 + $0x230] sm:$0xff]  ;;  %v2761_v51 = vld [vmem:[%s5194_s1 + $0x238] sm:$0xff]  ;;  %v3649_v52 = vpack.c.bf16 %v415_v49, %v414_v48  ;;  %v416_v54 = vld [vmem:[%s5194_s1 + $0x40] sm:$0xff]  ;;  %s4146_s9 = sshll.u32 %s4240_s6, 4  ;;  %s4147_s9 = int_to_ptr.vmem [resolvable:$false] %s4146_s9 }
  0x31   : > { %3770 = vmatprep.subr.bf16.mxu0 %v3769_v42  ;;  %v3777_v53 = vpack.c.bf16 %v2761_v51, %v2760_v50  ;;  %v417_v55 = vld [vmem:[%s5194_s1 + $0x48] sm:$0xff]  ;;  %v376_v56 = vld [vmem:[#allocation2] sm:$0xff]  ;;  %v418_v62 = vld [vmem:[%s5194_s1 + $0x50] sm:$0xff]  ;;  %p4144_p13 = pnand %p4143_p12, %p4319_p3  ;;  %s4148_s11 = scalar_lea.vmem %s4147_s9, 4096 }
  0x32   : > { %v2762_v57 = vld [vmem:[%s5194_s1 + $0x240] sm:$0xff]  ;;  %v2763_v58 = vld [vmem:[%s5194_s1 + $0x248] sm:$0xff]  ;;  %3165 = vmatprep.mubr.f32.mxu1 %v376_v56  ;;  %v3653_v60 = vpack.c.bf16 %v417_v55, %v416_v54  ;;  %v419_v63 = vld [vmem:[%s5194_s1 + $0x58] sm:$0xff]  ;;  %p4149_p1 = scmp.lt.s32.totalorder %s5134_s10, %s4147_s9  ;;  %p4150_p2 = scmp.lt.s32.totalorder %s4148_s11, %s4142_s5 }
  0x33   : > { %3644 = vmatpush3.bf16.msra.mxu1 %v3641_v38  ;;  %v4444_v59 = vld [vmem:[#allocation2 + $0x19] sm:$0xff]  ;;  %v3781_v61 = vpack.c.bf16 %v2763_v58, %v2762_v57  ;;  %v2764_v0 = vld [vmem:[%s5194_s1 + $0x250] sm:$0xff]  ;;  %v3657_v2 = vpack.c.bf16 %v419_v63, %v418_v62  ;;  %v421_v5 = vld [vmem:[%s5194_s1 + $0x68] sm:$0xff]  ;;  %p4145_p0 = pneg %p4144_p13 }
  0x34   : > { %3772 = vmatpush3.bf16.msra.mxu0 %v3769_v42  ;;  %3646 = vmatprep.subr.bf16.mxu1 %v3645_v46  ;;  %v2765_v1 = vld [vmem:[%s5194_s1 + $0x258] sm:$0xff]  ;;  %v420_v4 = vld [vmem:[%s5194_s1 + $0x60] sm:$0xff]  ;;  %v2767_v7 = vld [vmem:[%s5194_s1 + $0x268] sm:$0xff]  ;;  %p4151_p4 = por %p4150_p2, %p4149_p1 }
  0x35   : > { %3774 = vmatprep.subr.bf16.mxu0 %v3773_v47  ;;  %3389 = vmatprep.mubr.f32.mxu0 %v4444_v59  ;;  %v3785_v3 = vpack.c.bf16 %v2765_v1, %v2764_v0  ;;  %v2766_v6 = vld [vmem:[%s5194_s1 + $0x260] sm:$0xff]  ;;  %v3661_v8 = vpack.c.bf16 %v421_v5, %v420_v4  ;;  %v422_v10 = vld [vmem:[%s5194_s1 + $0x70] sm:$0xff]  ;;  %v423_v11 = vld [vmem:[%s5194_s1 + $0x78] sm:$0xff] }
  0x36   : > { %v3789_v9 = vpack.c.bf16 %v2767_v7, %v2766_v6  ;;  %v2768_v12 = vld [vmem:[%s5194_s1 + $0x270] sm:$0xff]  ;;  %v2769_v13 = vld [vmem:[%s5194_s1 + $0x278] sm:$0xff]  ;;  %v3665_v14 = vpack.c.bf16 %v423_v11, %v422_v10  ;;  %v2706_v16 = vld [vmem:[%s5194_s1 + $0x80] sm:$0xff]  ;;  %p4152_p5 = pnand %p4151_p4, %p4145_p0 }
  0x37   : > { %3648 = vmatpush3.bf16.msra.mxu1 %v3645_v46  ;;  %v3793_v15 = vpack.c.bf16 %v2769_v13, %v2768_v12  ;;  %v2707_v17 = vld [vmem:[%s5194_s1 + $0x88] sm:$0xff]  ;;  %v2770_v18 = vld [vmem:[%s5194_s1 + $0x280] sm:$0xff]  ;;  %v2708_v22 = vld [vmem:[%s5194_s1 + $0x90] sm:$0xff] }
  0x38   : > { %3776 = vmatpush3.bf16.msra.mxu0 %v3773_v47  ;;  %3650 = vmatprep.subr.bf16.mxu1 %v3649_v52  ;;  %v2771_v19 = vld [vmem:[%s5194_s1 + $0x288] sm:$0xff]  ;;  %v3669_v20 = vpack.c.bf16 %v2707_v17, %v2706_v16  ;;  %v2709_v23 = vld [vmem:[%s5194_s1 + $0x98] sm:$0xff]  ;;  %v2772_v25 = vld [vmem:[%s5194_s1 + $0x290] sm:$0xff] }
  0x39   : > { %3778 = vmatprep.subr.bf16.mxu0 %v3777_v53  ;;  %v3797_v21 = vpack.c.bf16 %v2771_v19, %v2770_v18  ;;  %v377_v24 = vld [vmem:[#allocation2 + $0x8] sm:$0xff]  ;;  %v2773_v26 = vld [vmem:[%s5194_s1 + $0x298] sm:$0xff]  ;;  %v3673_v29 = vpack.c.bf16 %v2709_v23, %v2708_v22  ;;  %v2710_v32 = vld [vmem:[%s5194_s1 + $0xa0] sm:$0xff] }
  0x3a   : > { %v4507_v27 = vld [vmem:[#allocation2 + $0x21] sm:$0xff]  ;;  %v4509_v28 = vld [vmem:[#allocation2 + $0x18] sm:$0xff]  ;;  %v3801_v31 = vpack.c.bf16 %v2773_v26, %v2772_v25  ;;  %v4532_v38 = vld [vmem:[#allocation2 + $0x30] sm:$0xff] }
  0x3b   : > { %3652 = vmatpush3.bf16.msra.mxu1 %v3649_v52  ;;  %v4511_v30 = vld [vmem:[#allocation2 + $0x31] sm:$0xff]  ;;  %v2711_v33 = vld [vmem:[%s5194_s1 + $0xa8] sm:$0xff]  ;;  %v4520_v34 = vld [vmem:[#allocation2 + $0x20] sm:$0xff] }
  0x3c   : > { %3780 = vmatpush3.bf16.msra.mxu0 %v3777_v53  ;;  %3654 = vmatprep.subr.bf16.mxu1 %v3653_v60  ;;  %v2774_v35 = vld [vmem:[%s5194_s1 + $0x2a0] sm:$0xff]  ;;  %v2775_v36 = vld [vmem:[%s5194_s1 + $0x2a8] sm:$0xff]  ;;  %v3677_v39 = vpack.c.bf16 %v2711_v33, %v2710_v32  ;;  %v2712_v42 = vld [vmem:[%s5194_s1 + $0xb0] sm:$0xff] }
  0x3d   : > { %3782 = vmatprep.subr.bf16.mxu0 %v3781_v61  ;;  %v4529_v37 = vld [vmem:[#allocation2 + $0x39] sm:$0xff]  ;;  %v4535_v40 = vld [vmem:[#allocation2 + $0x49] sm:$0xff]  ;;  %v3805_v41 = vpack.c.bf16 %v2775_v36, %v2774_v35  ;;  %v4553_v47 = vld [vmem:[#allocation2 + $0x51] sm:$0xff] }
  0x3e   : > { %v2713_v43 = vld [vmem:[%s5194_s1 + $0xb8] sm:$0xff]  ;;  %v2776_v45 = vld [vmem:[%s5194_s1 + $0x2b0] sm:$0xff]  ;;  %v4556_v48 = vld [vmem:[#allocation2 + $0x48] sm:$0xff] }
  0x3f   : > { %3656 = vmatpush3.bf16.msra.mxu1 %v3653_v60  ;;  %v4544_v44 = vld [vmem:[#allocation2 + $0x38] sm:$0xff]  ;;  %v3681_v49 = vpack.c.bf16 %v2713_v43, %v2712_v42  ;;  %v4559_v50 = vld [vmem:[#allocation2 + $0x61] sm:$0xff]  ;;  %v4568_v54 = vld [vmem:[#allocation2 + $0x50] sm:$0xff] }
  0x40   : > { %3784 = vmatpush3.bf16.msra.mxu0 %v3781_v61  ;;  %3658 = vmatprep.subr.bf16.mxu1 %v3657_v2  ;;  %v2777_v46 = vld [vmem:[%s5194_s1 + $0x2b8] sm:$0xff]  ;;  %v2714_v52 = vld [vmem:[%s5194_s1 + $0xc0] sm:$0xff]  ;;  %v2715_v53 = vld [vmem:[%s5194_s1 + $0xc8] sm:$0xff] }
  0x41   : > { %3786 = vmatprep.subr.bf16.mxu0 %v3785_v3  ;;  %v3809_v51 = vpack.c.bf16 %v2777_v46, %v2776_v45  ;;  %v2778_v55 = vld [vmem:[%s5194_s1 + $0x2c0] sm:$0xff]  ;;  %v2779_v56 = vld [vmem:[%s5194_s1 + $0x2c8] sm:$0xff]  ;;  %v3685_v60 = vpack.c.bf16 %v2715_v53, %v2714_v52  ;;  %v2716_v63 = vld [vmem:[%s5194_s1 + $0xd0] sm:$0xff] }
  0x42   : > { %v4577_v57 = vld [vmem:[#allocation2 + $0x69] sm:$0xff]  ;;  %v4580_v58 = vld [vmem:[#allocation2 + $0x60] sm:$0xff]  ;;  %v3813_v62 = vpack.c.bf16 %v2779_v56, %v2778_v55  ;;  %v2717_v0 = vld [vmem:[%s5194_s1 + $0xd8] sm:$0xff] }
  0x43   : > { %3660 = vmatpush3.bf16.msra.mxu1 %v3657_v2  ;;  %v4583_v61 = vld [vmem:[#allocation2 + $0x79] sm:$0xff]  ;;  %v4592_v1 = vld [vmem:[#allocation2 + $0x68] sm:$0xff]  ;;  %v2780_v2 = vld [vmem:[%s5194_s1 + $0x2d0] sm:$0xff]  ;;  %v3689_v6 = vpack.c.bf16 %v2717_v0, %v2716_v63 }
  0x44   : > { %3788 = vmatpush3.bf16.msra.mxu0 %v3785_v3  ;;  %3662 = vmatprep.subr.bf16.mxu1 %v3661_v8  ;;  %v2781_v3 = vld [vmem:[%s5194_s1 + $0x2d8] sm:$0xff]  ;;  %v4601_v4 = vld [vmem:[#allocation2 + $0x81] sm:$0xff]  ;;  %v4631_v17 = vld [vmem:[#allocation2 + $0xa9] sm:$0xff] }
  0x45   : > { %3790 = vmatprep.subr.bf16.mxu0 %v3789_v9  ;;  %v4604_v5 = vld [vmem:[#allocation2 + $0x78] sm:$0xff]  ;;  %v2719_v10 = vld [vmem:[%s5194_s1 + $0xe8] sm:$0xff]  ;;  %v4616_v11 = vld [vmem:[#allocation2 + $0x80] sm:$0xff] }
  0x46   : > { %v4607_v7 = vld [vmem:[#allocation2 + $0x91] sm:$0xff]  ;;  %v2782_v12 = vld [vmem:[%s5194_s1 + $0x2e0] sm:$0xff]  ;;  %v2783_v13 = vld [vmem:[%s5194_s1 + $0x2e8] sm:$0xff] }
  0x47   : > { %3664 = vmatpush3.bf16.msra.mxu1 %v3661_v8  ;;  %v3817_v8 = vpack.c.bf16 %v2781_v3, %v2780_v2  ;;  %v3821_v18 = vpack.c.bf16 %v2783_v13, %v2782_v12  ;;  %v2720_v19 = vld [vmem:[%s5194_s1 + $0xf0] sm:$0xff]  ;;  %v2785_v23 = vld [vmem:[%s5194_s1 + $0x2f8] sm:$0xff]  ;;  %v4652_v25 = vld [vmem:[#allocation2 + $0xa8] sm:$0xff] }
  0x48   : > { %3792 = vmatpush3.bf16.msra.mxu0 %v3789_v9  ;;  %3666 = vmatprep.subr.bf16.mxu1 %v3665_v14  ;;  %v2718_v9 = vld [vmem:[%s5194_s1 + $0xe0] sm:$0xff]  ;;  %v2784_v22 = vld [vmem:[%s5194_s1 + $0x2f0] sm:$0xff]  ;;  %v2723_v33 = vld [vmem:[%s5194_s1 + $0x108] sm:$0xff] }
  0x49   : > { %3794 = vmatprep.subr.bf16.mxu0 %v3793_v15  ;;  %v3693_v16 = vpack.c.bf16 %v2719_v10, %v2718_v9  ;;  %v2722_v32 = vld [vmem:[%s5194_s1 + $0x100] sm:$0xff]  ;;  %v4664_v35 = vld [vmem:[#allocation2 + $0xb0] sm:$0xff]  ;;  %v2789_v55 = vld [vmem:[%s5194_s1 + $0x318] sm:$0xff] }
  0x4a   : > { %v2786_v36 = vld [vmem:[%s5194_s1 + $0x300] sm:$0xff]  ;;  %v3701_v43 = vpack.c.bf16 %v2723_v33, %v2722_v32  ;;  %v602_v52 = vld [vmem:[#allocation2 + $0x9] sm:$0xff] }
  0x4b   : > { %3668 = vmatpush3.bf16.msra.mxu1 %v3665_v14  ;;  %v4625_v14 = vld [vmem:[#allocation2 + $0x99] sm:$0xff]  ;;  %v601_v42 = vld [vmem:[#allocation2 + $0x1] sm:$0xff]  ;;  %v2788_v53 = vld [vmem:[%s5194_s1 + $0x310] sm:$0xff] }
  0x4c   : > { %3796 = vmatpush3.bf16.msra.mxu0 %v3793_v15  ;;  %3670 = vmatprep.subr.bf16.mxu1 %v3669_v20  ;;  %v4628_v15 = vld [vmem:[#allocation2 + $0x90] sm:$0xff]  ;;  %v4677_v45 = vld [vmem:[#allocation2 + $0x1a] sm:$0xff]  ;;  %v4692_v56 = vld [vmem:[#allocation2 + $0x22] sm:$0xff]  ;;  %v3833_v63 = vpack.c.bf16 %v2789_v55, %v2788_v53 }
  0x4d   : > { %3798 = vmatprep.subr.bf16.mxu0 %v3797_v21  ;;  %v2726_v0 = vld [vmem:[%s5194_s1 + $0x120] sm:$0xff]  ;;  %v2727_v2 = vld [vmem:[%s5194_s1 + $0x128] sm:$0xff]  ;;  %v2728_v13 = vld [vmem:[%s5194_s1 + $0x130] sm:$0xff] }
  0x4e   : > { %3166 = vmatmul.mubr.f32.vlgmr.msra.gmra.mrb[0].mxu1 %v377_v24  ;;  %v4649_v24 = vld [vmem:[#allocation2 + $0xb1] sm:$0xff]  ;;  %v2790_v3 = vld [vmem:[%s5194_s1 + $0x320] sm:$0xff]  ;;  %v3709_v9 = vpack.c.bf16 %v2727_v2, %v2726_v0  ;;  %v2795_v32 = vld [vmem:[%s5194_s1 + $0x348] sm:$0xff] }
  0x4f   : > { %3390 = vmatmul.mubr.f32.vlgmr.msra.gmra.mrb[0].mxu0 %v4507_v27  ;;  %3672 = vmatpush3.bf16.msra.mxu1 %v3669_v20  ;;  %v2721_v20 = vld [vmem:[%s5194_s1 + $0xf8] sm:$0xff]  ;;  %v4715_v10 = vld [vmem:[#allocation2 + $0x4a] sm:$0xff]  ;;  %v2798_v2 = vld [vmem:[%s5194_s1 + $0x360] sm:$0xff] }
  0x50   : > { %3800 = vmatpush3.bf16.msra.mxu0 %v3797_v21  ;;  %3168 = vmatprep.mubr.f32.mxu1 %v4509_v28  ;;  %v4640_v21 = vld [vmem:[#allocation2 + $0x98] sm:$0xff]  ;;  %v3697_v26 = vpack.c.bf16 %v2721_v20, %v2720_v19  ;;  %v4735_v20 = vld [vmem:[#allocation2 + $0x62] sm:$0xff]  ;;  %v4751_v33 = vld [vmem:[#allocation2 + $0x6a] sm:$0xff] }
  0x51   : > { %3392 = vmatprep.mubr.f32.mxu0 %v4511_v30  ;;  %3674 = vmatprep.subr.bf16.mxu1 %v3673_v29  ;;  %v4775_v55 = vld [vmem:[#allocation2 + $0x92] sm:$0xff]  ;;  %v2735_v0 = vld [vmem:[%s5194_s1 + $0x168] sm:$0xff] }
  0x52   : > { %3169 = vmatmul.mubr.f32.gmra.mrb[2].mxu1 %v4520_v34  ;;  %3802 = vmatprep.subr.bf16.mxu0 %v3801_v31 }
  0x53   : > { %3393 = vmatmul.mubr.f32.gmra.mrb[2].mxu0 %v4529_v37  ;;  %3676 = vmatpush3.bf16.msra.mxu1 %v3673_v29  ;;  %v4655_v29 = vld [vmem:[#allocation2 + $0xc1] sm:$0xff] }
  0x54   : > { %3804 = vmatpush3.bf16.msra.mxu0 %v3801_v31  ;;  %3171 = vmatprep.mubr.f32.mxu1 %v4532_v38  ;;  %v3825_v31 = vpack.c.bf16 %v2785_v23, %v2784_v22  ;;  %v2730_v23 = vld [vmem:[%s5194_s1 + $0x140] sm:$0xff] }
  0x55   : > { %3395 = vmatprep.mubr.f32.mxu0 %v4535_v40  ;;  %3678 = vmatprep.subr.bf16.mxu1 %v3677_v39 }
  0x56   : > { %3172 = vmatmul.mubr.f32.gmra.mrb[4].mxu1 %v4544_v44  ;;  %3806 = vmatprep.subr.bf16.mxu0 %v3805_v41 }
  0x57   : > { %3396 = vmatmul.mubr.f32.gmra.mrb[4].mxu0 %v4553_v47  ;;  %3680 = vmatpush3.bf16.msra.mxu1 %v3677_v39  ;;  %v2787_v39 = vld [vmem:[%s5194_s1 + $0x308] sm:$0xff] }
  0x58   : > { %3808 = vmatpush3.bf16.msra.mxu0 %v3805_v41  ;;  %3174 = vmatprep.mubr.f32.mxu1 %v4556_v48  ;;  %v4673_v41 = vld [vmem:[#allocation2 + $0xc9] sm:$0xff]  ;;  %v3829_v46 = vpack.c.bf16 %v2787_v39, %v2786_v36  ;;  %v4755_v39 = vld [vmem:[#allocation2 + $0x7a] sm:$0xff] }
  0x59   : > { %3398 = vmatprep.mubr.f32.mxu0 %v4559_v50  ;;  %3682 = vmatprep.subr.bf16.mxu1 %v3681_v49 }
  0x5a   : > { %3175 = vmatmul.mubr.f32.gmra.mrb[6].mxu1 %v4568_v54  ;;  %3810 = vmatprep.subr.bf16.mxu0 %v3809_v51 }
  0x5b   : > { %3399 = vmatmul.mubr.f32.gmra.mrb[6].mxu0 %v4577_v57  ;;  %3684 = vmatpush3.bf16.msra.mxu1 %v3681_v49  ;;  %v2724_v49 = vld [vmem:[%s5194_s1 + $0x110] sm:$0xff] }
  0x5c   : > { %3812 = vmatpush3.bf16.msra.mxu0 %v3809_v51  ;;  %3177 = vmatprep.mubr.f32.mxu1 %v4580_v58  ;;  %v2725_v51 = vld [vmem:[%s5194_s1 + $0x118] sm:$0xff] }
  0x5d   : > { %3401 = vmatprep.mubr.f32.mxu0 %v4583_v61  ;;  %3686 = vmatprep.subr.bf16.mxu1 %v3685_v60 }
  0x5e   : > { %3178 = vmatmul.mubr.f32.gmra.mrb[8].mxu1 %v4592_v1  ;;  %3814 = vmatprep.subr.bf16.mxu0 %v3813_v62 }
  0x5f   : > { %3402 = vmatmul.mubr.f32.gmra.mrb[8].mxu0 %v4601_v4  ;;  %3688 = vmatpush3.bf16.msra.mxu1 %v3685_v60  ;;  %v3705_v60 = vpack.c.bf16 %v2725_v51, %v2724_v49  ;;  %v2796_v49 = vld [vmem:[%s5194_s1 + $0x350] sm:$0xff]  ;;  %v2797_v51 = vld [vmem:[%s5194_s1 + $0x358] sm:$0xff] }
  0x60   : > { %3816 = vmatpush3.bf16.msra.mxu0 %v3813_v62  ;;  %3180 = vmatprep.mubr.f32.mxu1 %v4604_v5  ;;  %v4695_v62 = vld [vmem:[#allocation2 + $0x32] sm:$0xff] }
  0x61   : > { %3404 = vmatprep.mubr.f32.mxu0 %v4607_v7  ;;  %3690 = vmatprep.subr.bf16.mxu1 %v3689_v6 }
  0x62   : > { %3181 = vmatmul.mubr.f32.gmra.mrb[10].mxu1 %v4616_v11  ;;  %3818 = vmatprep.subr.bf16.mxu0 %v3817_v8 }
  0x63   : > { %3405 = vmatmul.mubr.f32.gmra.mrb[10].mxu0 %v4625_v14  ;;  %3692 = vmatpush3.bf16.msra.mxu1 %v3689_v6  ;;  %v2791_v6 = vld [vmem:[%s5194_s1 + $0x328] sm:$0xff] }
  0x64   : > { %3820 = vmatpush3.bf16.msra.mxu0 %v3817_v8  ;;  %3183 = vmatprep.mubr.f32.mxu1 %v4628_v15  ;;  %v4711_v8 = vld [vmem:[#allocation2 + $0x3a] sm:$0xff]  ;;  %v3837_v12 = vpack.c.bf16 %v2791_v6, %v2790_v3  ;;  %v2799_v3 = vld [vmem:[%s5194_s1 + $0x368] sm:$0xff] }
  0x65   : > { %3407 = vmatprep.mubr.f32.mxu0 %v4631_v17  ;;  %3694 = vmatprep.subr.bf16.mxu1 %v3693_v16  ;;  %v4791_v6 = vld [vmem:[#allocation2 + $0x9a] sm:$0xff] }
  0x66   : > { %3184 = vmatmul.mubr.f32.gmra.mrb[12].mxu1 %v4640_v21  ;;  %3822 = vmatprep.subr.bf16.mxu0 %v3821_v18 }
  0x67   : > { %3408 = vmatmul.mubr.f32.gmra.mrb[12].mxu0 %v4649_v24  ;;  %3696 = vmatpush3.bf16.msra.mxu1 %v3693_v16  ;;  %v2792_v16 = vld [vmem:[%s5194_s1 + $0x330] sm:$0xff] }
  0x68   : > { %3824 = vmatpush3.bf16.msra.mxu0 %v3821_v18  ;;  %3186 = vmatprep.mubr.f32.mxu1 %v4652_v25  ;;  %v4731_v18 = vld [vmem:[#allocation2 + $0x52] sm:$0xff] }
  0x69   : > { %3410 = vmatprep.mubr.f32.mxu0 %v4655_v29  ;;  %3698 = vmatprep.subr.bf16.mxu1 %v3697_v26 }
  0x6a   : > { %3187 = vmatmul.mubr.f32.gmra.mrb[14].mxu1 %v4664_v35  ;;  %3826 = vmatprep.subr.bf16.mxu0 %v3825_v31 }
  0x6b   : > { %3411 = vmatmul.mubr.f32.gmra.mrb[14].mxu0 %v4673_v41  ;;  %3700 = vmatpush3.bf16.msra.mxu1 %v3697_v26  ;;  %v2731_v26 = vld [vmem:[%s5194_s1 + $0x148] sm:$0xff] }
  0x6c   : > { %3828 = vmatpush3.bf16.msra.mxu0 %v3825_v31  ;;  %3221 = vmatprep.mubr.f32.mxu1 %v601_v42  ;;  %v2794_v31 = vld [vmem:[%s5194_s1 + $0x340] sm:$0xff]  ;;  %v3717_v36 = vpack.c.bf16 %v2731_v26, %v2730_v23 }
  0x6d   : > { %3445 = vmatprep.mubr.f32.mxu0 %v4677_v45  ;;  %3702 = vmatprep.subr.bf16.mxu1 %v3701_v43  ;;  %v3845_v42 = vpack.c.bf16 %v2795_v32, %v2794_v31  ;;  %v4815_v26 = vld [vmem:[#allocation2 + $0xc2] sm:$0xff] }
  0x6e   : > { %3222 = vmatmul.mubr.f32.vlgmr.msra.gmra.mrb[0].mxu1 %v602_v52  ;;  %3830 = vmatprep.subr.bf16.mxu0 %v3829_v46  ;;  %v4771_v52 = vld [vmem:[#allocation2 + $0x82] sm:$0xff] }
  0x6f   : > { %3446 = vmatmul.mubr.f32.vlgmr.msra.gmra.mrb[0].mxu0 %v4692_v56  ;;  %3704 = vmatpush3.bf16.msra.mxu1 %v3701_v43  ;;  %v2732_v43 = vld [vmem:[%s5194_s1 + $0x150] sm:$0xff]  ;;  %v2738_v32 = vld [vmem:[%s5194_s1 + $0x180] sm:$0xff] }
  0x70   : > { %3832 = vmatpush3.bf16.msra.mxu0 %v3829_v46  ;;  %3224 = vmatprep.mubr.f32.mxu1 %v4444_v59  ;;  %v2729_v59 = vld [vmem:[%s5194_s1 + $0x138] sm:$0xff] }
  0x71   : > { %3448 = vmatprep.mubr.f32.mxu0 %v4695_v62  ;;  %3706 = vmatprep.subr.bf16.mxu1 %v3705_v60  ;;  %v3713_v19 = vpack.c.bf16 %v2729_v59, %v2728_v13  ;;  %v2733_v46 = vld [vmem:[%s5194_s1 + $0x158] sm:$0xff]  ;;  %v3853_v13 = vpack.c.bf16 %v2799_v3, %v2798_v2  ;;  %v2736_v59 = vld [vmem:[%s5194_s1 + $0x170] sm:$0xff] }
  0x72   : > { %3225 = vmatmul.mubr.f32.gmra.mrb[2].mxu1 %v4507_v27  ;;  %3834 = vmatprep.subr.bf16.mxu0 %v3833_v63  ;;  %v2793_v27 = vld [vmem:[%s5194_s1 + $0x338] sm:$0xff]  ;;  %v3721_v53 = vpack.c.bf16 %v2733_v46, %v2732_v43  ;;  %v2803_v43 = vld [vmem:[%s5194_s1 + $0x388] sm:$0xff]  ;;  %v2804_v2 = vld [vmem:[%s5194_s1 + $0x390] sm:$0xff] }
  0x73   : > { %3449 = vmatmul.mubr.f32.gmra.mrb[2].mxu0 %v4711_v8  ;;  %3708 = vmatpush3.bf16.msra.mxu1 %v3705_v60  ;;  %v3841_v22 = vpack.c.bf16 %v2793_v27, %v2792_v16  ;;  %v3849_v60 = vpack.c.bf16 %v2797_v51, %v2796_v49  ;;  %v2737_v16 = vld [vmem:[%s5194_s1 + $0x178] sm:$0xff]  ;;  %v2800_v27 = vld [vmem:[%s5194_s1 + $0x370] sm:$0xff]  ;;  %v827_v49 = vld [vmem:[#allocation2 + $0x2] sm:$0xff] }
  0x74   : > { %3836 = vmatpush3.bf16.msra.mxu0 %v3833_v63  ;;  %3227 = vmatprep.mubr.f32.mxu1 %v4511_v30  ;;  %v2734_v63 = vld [vmem:[%s5194_s1 + $0x160] sm:$0xff]  ;;  %v3729_v23 = vpack.c.bf16 %v2737_v16, %v2736_v59  ;;  %v4831_v46 = vld [vmem:[#allocation2 + $0xca] sm:$0xff]  ;;  %v2805_v3 = vld [vmem:[%s5194_s1 + $0x398] sm:$0xff] }
  0x75   : > { %3451 = vmatprep.mubr.f32.mxu0 %v4715_v10  ;;  %3710 = vmatprep.subr.bf16.mxu1 %v3709_v9  ;;  %v2742_v59 = vld [vmem:[%s5194_s1 + $0x1a0] sm:$0xff]  ;;  %v2743_v16 = vld [vmem:[%s5194_s1 + $0x1a8] sm:$0xff] }
  0x76   : > { %3228 = vmatmul.mubr.f32.gmra.mrb[4].mxu1 %v4529_v37  ;;  %3838 = vmatprep.subr.bf16.mxu0 %v3837_v12 }
  0x77   : > { %3452 = vmatmul.mubr.f32.gmra.mrb[4].mxu0 %v4731_v18  ;;  %3712 = vmatpush3.bf16.msra.mxu1 %v3709_v9  ;;  %v3725_v9 = vpack.c.bf16 %v2735_v0, %v2734_v63  ;;  %v2741_v63 = vld [vmem:[%s5194_s1 + $0x198] sm:$0xff]  ;;  %v828_v0 = vld [vmem:[#allocation2 + $0xa] sm:$0xff] }
  0x78   : > { %3840 = vmatpush3.bf16.msra.mxu0 %v3837_v12  ;;  %3230 = vmatprep.mubr.f32.mxu1 %v4535_v40  ;;  %v4795_v12 = vld [vmem:[#allocation2 + $0xaa] sm:$0xff] }
  0x79   : > { %3454 = vmatprep.mubr.f32.mxu0 %v4735_v20  ;;  %3714 = vmatprep.subr.bf16.mxu1 %v3713_v19 }
  0x7a   : > { %3231 = vmatmul.mubr.f32.gmra.mrb[6].mxu1 %v4553_v47  ;;  %3842 = vmatprep.subr.bf16.mxu0 %v3841_v22 }
  0x7b   : > { %3455 = vmatmul.mubr.f32.gmra.mrb[6].mxu0 %v4751_v33  ;;  %3716 = vmatpush3.bf16.msra.mxu1 %v3713_v19  ;;  %v2801_v19 = vld [vmem:[%s5194_s1 + $0x378] sm:$0xff] }
  0x7c   : > { %3844 = vmatpush3.bf16.msra.mxu0 %v3841_v22  ;;  %3233 = vmatprep.mubr.f32.mxu1 %v4559_v50  ;;  %v4811_v22 = vld [vmem:[#allocation2 + $0xb2] sm:$0xff]  ;;  %v3857_v31 = vpack.c.bf16 %v2801_v19, %v2800_v27  ;;  %v2806_v27 = vld [vmem:[%s5194_s1 + $0x3a0] sm:$0xff]  ;;  %v2807_v19 = vld [vmem:[%s5194_s1 + $0x3a8] sm:$0xff] }
  0x7d   : > { %3457 = vmatprep.mubr.f32.mxu0 %v4755_v39  ;;  %3718 = vmatprep.subr.bf16.mxu1 %v3717_v36 }
  0x7e   : > { %3234 = vmatmul.mubr.f32.gmra.mrb[8].mxu1 %v4577_v57  ;;  %3846 = vmatprep.subr.bf16.mxu0 %v3845_v42 }
  0x7f   : > { %3458 = vmatmul.mubr.f32.gmra.mrb[8].mxu0 %v4771_v52  ;;  %3720 = vmatpush3.bf16.msra.mxu1 %v3717_v36  ;;  %v2739_v36 = vld [vmem:[%s5194_s1 + $0x188] sm:$0xff] }
  0x80   : > { %3848 = vmatpush3.bf16.msra.mxu0 %v3845_v42  ;;  %3236 = vmatprep.mubr.f32.mxu1 %v4583_v61  ;;  %v2802_v42 = vld [vmem:[%s5194_s1 + $0x380] sm:$0xff]  ;;  %v3733_v51 = vpack.c.bf16 %v2739_v36, %v2738_v32  ;;  %v2744_v32 = vld [vmem:[%s5194_s1 + $0x1b0] sm:$0xff]  ;;  %v2745_v36 = vld [vmem:[%s5194_s1 + $0x1b8] sm:$0xff] }
  0x81   : > { %3460 = vmatprep.mubr.f32.mxu0 %v4775_v55  ;;  %3722 = vmatprep.subr.bf16.mxu1 %v3721_v53 }
  0x82   : > { %3237 = vmatmul.mubr.f32.gmra.mrb[10].mxu1 %v4601_v4  ;;  %3850 = vmatprep.subr.bf16.mxu0 %v3849_v60 }
  0x83   : > { %3461 = vmatmul.mubr.f32.gmra.mrb[10].mxu0 %v4791_v6  ;;  %3724 = vmatpush3.bf16.msra.mxu1 %v3721_v53  ;;  %v3861_v53 = vpack.c.bf16 %v2803_v43, %v2802_v42  ;;  %v3745_v42 = vpack.c.bf16 %v2745_v36, %v2744_v32  ;;  %v4929_v36 = vld [vmem:[#allocation2 + $0xc0] sm:$0xff] }
  0x84   : > { %3852 = vmatpush3.bf16.msra.mxu0 %v3849_v60  ;;  %3239 = vmatprep.mubr.f32.mxu1 %v4607_v7  ;;  %v2740_v60 = vld [vmem:[%s5194_s1 + $0x190] sm:$0xff] }
  0x85   : > { %3463 = vmatprep.mubr.f32.mxu0 %v4795_v12  ;;  %3726 = vmatprep.subr.bf16.mxu1 %v3725_v9 }
  0x86   : > { %3240 = vmatmul.mubr.f32.gmra.mrb[12].mxu1 %v4625_v14  ;;  %3854 = vmatprep.subr.bf16.mxu0 %v3853_v13 }
  0x87   : > { %3464 = vmatmul.mubr.f32.gmra.mrb[12].mxu0 %v4811_v22  ;;  %3728 = vmatpush3.bf16.msra.mxu1 %v3725_v9  ;;  %v3737_v9 = vpack.c.bf16 %v2741_v63, %v2740_v60  ;;  %v2811_v60 = vld [vmem:[%s5194_s1 + $0x3c8] sm:$0xff] }
  0x88   : > { %3856 = vmatpush3.bf16.msra.mxu0 %v3853_v13  ;;  %3242 = vmatprep.mubr.f32.mxu1 %v4631_v17  ;;  %v3865_v13 = vpack.c.bf16 %v2805_v3, %v2804_v2  ;;  %v2748_v2 = vld [vmem:[%s5194_s1 + $0x1d0] sm:$0xff]  ;;  %v2749_v3 = vld [vmem:[%s5194_s1 + $0x1d8] sm:$0xff] }
  0x89   : > { %3466 = vmatprep.mubr.f32.mxu0 %v4815_v26  ;;  %3730 = vmatprep.subr.bf16.mxu1 %v3729_v23 }
  0x8a   : > { %3243 = vmatmul.mubr.f32.gmra.mrb[14].mxu1 %v4649_v24  ;;  %3858 = vmatprep.subr.bf16.mxu0 %v3857_v31 }
  0x8b   : > { %3467 = vmatmul.mubr.f32.gmra.mrb[14].mxu0 %v4831_v46  ;;  %3732 = vmatpush3.bf16.msra.mxu1 %v3729_v23  ;;  %v3741_v23 = vpack.c.bf16 %v2743_v16, %v2742_v59  ;;  %v3753_v59 = vpack.c.bf16 %v2749_v3, %v2748_v2  ;;  %v2819_v2 = vld [vmem:[%s5194_s1 + $0x408] sm:$0xff]  ;;  %v1748_v3 = vld [vmem:[#allocation2 + $0xe0] sm:$0xff] }
  0x8c   : > { %3860 = vmatpush3.bf16.msra.mxu0 %v3857_v31  ;;  %3277 = vmatprep.mubr.f32.mxu1 %v827_v49  ;;  %v3869_v31 = vpack.c.bf16 %v2807_v19, %v2806_v27  ;;  %v2746_v49 = vld [vmem:[%s5194_s1 + $0x1c0] sm:$0xff]  ;;  %v2751_v19 = vld [vmem:[%s5194_s1 + $0x1e8] sm:$0xff] }
  0x8d   : > { %3501 = vmatprep.mubr.f32.mxu0 %v4532_v38  ;;  %3734 = vmatprep.subr.bf16.mxu1 %v3733_v51  ;;  %v2750_v27 = vld [vmem:[%s5194_s1 + $0x1e0] sm:$0xff] }
  0x8e   : > { %3278 = vmatmul.mubr.f32.vlgmr.msra.gmra.mrb[0].mxu1 %v828_v0  ;;  %3862 = vmatprep.subr.bf16.mxu0 %v3861_v53  ;;  %v3757_v32 = vpack.c.bf16 %v2751_v19, %v2750_v27  ;;  %v2822_v27 = vld [vmem:[%s5194_s1 + $0x420] sm:$0xff]  ;;  %v2823_v19 = vld [vmem:[%s5194_s1 + $0x428] sm:$0xff] }
  0x8f   : > { %3502 = vmatmul.mubr.f32.vlgmr.msra.gmra.mrb[0].mxu0 %v4544_v44  ;;  %3736 = vmatpush3.bf16.msra.mxu1 %v3733_v51  ;;  %v2747_v51 = vld [vmem:[%s5194_s1 + $0x1c8] sm:$0xff] }
  0x90   : > { %3864 = vmatpush3.bf16.msra.mxu0 %v3861_v53  ;;  %3280 = vmatprep.mubr.f32.mxu1 %v4677_v45  ;;  %v2808_v45 = vld [vmem:[%s5194_s1 + $0x3b0] sm:$0xff]  ;;  %v2810_v53 = vld [vmem:[%s5194_s1 + $0x3c0] sm:$0xff]  ;;  %v3749_v63 = vpack.c.bf16 %v2747_v51, %v2746_v49  ;;  %v2817_v49 = vld [vmem:[%s5194_s1 + $0x3f8] sm:$0xff] }
  0x91   : > { %3504 = vmatprep.mubr.f32.mxu0 %v4556_v48  ;;  %3738 = vmatprep.subr.bf16.mxu1 %v3737_v9  ;;  %v3877_v0 = vpack.c.bf16 %v2811_v60, %v2810_v53  ;;  %v4945_v51 = vld [vmem:[#allocation2 + $0xc8] sm:$0xff]  ;;  %v1747_v60 = vld [vmem:[#allocation2 + $0xd8] sm:$0xff] }
  0x92   : > { %3281 = vmatmul.mubr.f32.gmra.mrb[2].mxu1 %v4692_v56  ;;  %3866 = vmatprep.subr.bf16.mxu0 %v3865_v13  ;;  %v2809_v56 = vld [vmem:[%s5194_s1 + $0x3b8] sm:$0xff] }
  0x93   : > { %3505 = vmatmul.mubr.f32.gmra.mrb[2].mxu0 %v4568_v54  ;;  %3740 = vmatpush3.bf16.msra.mxu1 %v3737_v9  ;;  %v3873_v43 = vpack.c.bf16 %v2809_v56, %v2808_v45  ;;  %v2812_v9 = vld [vmem:[%s5194_s1 + $0x3d0] sm:$0xff] }
  0x94   : > { %3868 = vmatpush3.bf16.msra.mxu0 %v3865_v13  ;;  %3283 = vmatprep.mubr.f32.mxu1 %v4695_v62  ;;  %v2813_v13 = vld [vmem:[%s5194_s1 + $0x3d8] sm:$0xff]  ;;  %v2752_v56 = vld [vmem:[%s5194_s1 + $0x1f0] sm:$0xff] }
  0x95   : > { %3507 = vmatprep.mubr.f32.mxu0 %v4580_v58  ;;  %3742 = vmatprep.subr.bf16.mxu1 %v3741_v23  ;;  %v3881_v16 = vpack.c.bf16 %v2813_v13, %v2812_v9  ;;  %v2820_v13 = vld [vmem:[%s5194_s1 + $0x410] sm:$0xff] }
  0x96   : > { %3284 = vmatmul.mubr.f32.gmra.mrb[4].mxu1 %v4711_v8  ;;  %3870 = vmatprep.subr.bf16.mxu0 %v3869_v31 }
  0x97   : > { %3508 = vmatmul.mubr.f32.gmra.mrb[4].mxu0 %v4592_v1  ;;  %3744 = vmatpush3.bf16.msra.mxu1 %v3741_v23  ;;  %v2814_v23 = vld [vmem:[%s5194_s1 + $0x3e0] sm:$0xff] }
  0x98   : > { %3872 = vmatpush3.bf16.msra.mxu0 %v3869_v31  ;;  %3286 = vmatprep.mubr.f32.mxu1 %v4715_v10  ;;  %v2815_v31 = vld [vmem:[%s5194_s1 + $0x3e8] sm:$0xff] }
  0x99   : > { %3510 = vmatprep.mubr.f32.mxu0 %v4604_v5  ;;  %3746 = vmatprep.subr.bf16.mxu1 %v3745_v42  ;;  %v3885_v45 = vpack.c.bf16 %v2815_v31, %v2814_v23 }
  0x9a   : > { %3287 = vmatmul.mubr.f32.gmra.mrb[6].mxu1 %v4731_v18  ;;  %3874 = vmatprep.subr.bf16.mxu0 %v3873_v43 }
  0x9b   : > { %3511 = vmatmul.mubr.f32.gmra.mrb[6].mxu0 %v4616_v11  ;;  %3748 = vmatpush3.bf16.msra.mxu1 %v3745_v42  ;;  %v2753_v42 = vld [vmem:[%s5194_s1 + $0x1f8] sm:$0xff] }
  0x9c   : > { %3876 = vmatpush3.bf16.msra.mxu0 %v3873_v43  ;;  %3289 = vmatprep.mubr.f32.mxu1 %v4735_v20  ;;  %v2816_v43 = vld [vmem:[%s5194_s1 + $0x3f0] sm:$0xff]  ;;  %v3761_v53 = vpack.c.bf16 %v2753_v42, %v2752_v56 }
  0x9d   : > { %3513 = vmatprep.mubr.f32.mxu0 %v4628_v15  ;;  %3750 = vmatprep.subr.bf16.mxu1 %v3749_v63 }
  0x9e   : > { %3290 = vmatmul.mubr.f32.gmra.mrb[8].mxu1 %v4751_v33  ;;  %3878 = vmatprep.subr.bf16.mxu0 %v3877_v0 }
  0x9f   : > { %3514 = vmatmul.mubr.f32.gmra.mrb[8].mxu0 %v4640_v21  ;;  %3752 = vmatpush3.bf16.msra.mxu1 %v3749_v63  ;;  %v3889_v63 = vpack.c.bf16 %v2817_v49, %v2816_v43 }
  0xa0   : > { %3880 = vmatpush3.bf16.msra.mxu0 %v3877_v0  ;;  %3292 = vmatprep.mubr.f32.mxu1 %v4755_v39  ;;  %v2818_v0 = vld [vmem:[%s5194_s1 + $0x400] sm:$0xff] }
  0xa1   : > { %3516 = vmatprep.mubr.f32.mxu0 %v4652_v25  ;;  %3754 = vmatprep.subr.bf16.mxu1 %v3753_v59  ;;  %v3893_v9 = vpack.c.bf16 %v2819_v2, %v2818_v0 }
  0xa2   : > { %3293 = vmatmul.mubr.f32.gmra.mrb[10].mxu1 %v4771_v52  ;;  %3882 = vmatprep.subr.bf16.mxu0 %v3881_v16 }
  0xa3   : > { %3517 = vmatmul.mubr.f32.gmra.mrb[10].mxu0 %v4664_v35  ;;  %3756 = vmatpush3.bf16.msra.mxu1 %v3753_v59  ;;  %v2821_v59 = vld [vmem:[%s5194_s1 + $0x418] sm:$0xff] }
  0xa4   : > { %3884 = vmatpush3.bf16.msra.mxu0 %v3881_v16  ;;  %3295 = vmatprep.mubr.f32.mxu1 %v4775_v55  ;;  %v3897_v16 = vpack.c.bf16 %v2821_v59, %v2820_v13 }
  0xa5   : > { %3519 = vmatprep.mubr.f32.mxu0 %v4929_v36  ;;  %3758 = vmatprep.subr.bf16.mxu1 %v3757_v32 }
  0xa6   : > { %3296 = vmatmul.mubr.f32.gmra.mrb[12].mxu1 %v4791_v6  ;;  %3886 = vmatprep.subr.bf16.mxu0 %v3885_v45 }
  0xa7   : > { %3520 = vmatmul.mubr.f32.gmra.mrb[12].mxu0 %v4945_v51  ;;  %3760 = vmatpush3.bf16.msra.mxu1 %v3757_v32 }
  0xa8   : > { %3888 = vmatpush3.bf16.msra.mxu0 %v3885_v45  ;;  %3298 = vmatprep.mubr.f32.mxu1 %v4795_v12 }
  0xa9   : > { %3522 = vmatprep.mubr.f32.mxu0 %v1747_v60  ;;  %3762 = vmatprep.subr.bf16.mxu1 %v3761_v53 }
  0xaa   : > { %3299 = vmatmul.mubr.f32.gmra.mrb[14].mxu1 %v4811_v22  ;;  %3890 = vmatprep.subr.bf16.mxu0 %v3889_v63 }
  0xab   : > { %3523 = vmatmul.mubr.f32.gmra.mrb[14].mxu0 %v1748_v3  ;;  %3764 = vmatpush3.bf16.msra.mxu1 %v3761_v53  ;;  %v5065_v53 = vld [vmem:[%s5195_s2] ss:$0 sm:$0xff] }
  0xac   : > { %3892 = vmatpush3.bf16.msra.mxu0 %v3889_v63  ;;  %3333 = vmatprep.mubr.f32.mxu1 %v4509_v28  ;;  %v3901_v28 = vpack.c.bf16 %v2823_v19, %v2822_v27 }
  0xad   : > { %3557 = vmatprep.mubr.f32.mxu0 %v4511_v30  ;;  %3894 = vmatprep.subr.bf16.mxu0 %v3893_v9  ;;  %v2824_v30 = vld [vmem:[%s5194_s1 + $0x430] sm:$0xff] }
  0xae   : > { %3334 = vmatmul.mubr.f32.vlgmr.msra.gmra.mrb[0].mxu1 %v4520_v34  ;;  %3925 = vmatprep.subr.bf16.mxu1 %v3893_v9  ;;  %v2825_v34 = vld [vmem:[%s5194_s1 + $0x438] sm:$0xff] }
  0xaf   : > { %3558 = vmatmul.mubr.f32.vlgmr.msra.gmra.mrb[0].mxu0 %v4529_v37  ;;  %3933 = vmatpush3.bf16.msra.mxu1 %v3893_v9  ;;  %v3905_v37 = vpack.c.bf16 %v2825_v34, %v2824_v30 }
  0xb0   : > { %3896 = vmatpush3.bf16.msra.mxu0 %v3893_v9  ;;  %3336 = vmatprep.mubr.f32.mxu1 %v4532_v38  ;;  %v2826_v38 = vld [vmem:[%s5194_s1 + $0x440] sm:$0xff] }
  0xb1   : > { %3560 = vmatprep.mubr.f32.mxu0 %v4535_v40  ;;  %3898 = vmatprep.subr.bf16.mxu0 %v3897_v16  ;;  %v2827_v40 = vld [vmem:[%s5194_s1 + $0x448] sm:$0xff]  ;;  %v5070_v9 = vld [vmem:[%s5196_s3] ss:$0 sm:$0xff] }
  0xb2   : > { %3337 = vmatmul.mubr.f32.gmra.mrb[2].mxu1 %v4544_v44  ;;  %3926 = vmatprep.subr.bf16.mxu1 %v3897_v16  ;;  %v3909_v44 = vpack.c.bf16 %v2827_v40, %v2826_v38 }
  0xb3   : > { %3561 = vmatmul.mubr.f32.gmra.mrb[2].mxu0 %v4553_v47  ;;  %3934 = vmatpush3.bf16.msra.mxu1 %v3897_v16  ;;  %v2828_v47 = vld [vmem:[%s5194_s1 + $0x450] sm:$0xff] }
  0xb4   : > { %3900 = vmatpush3.bf16.msra.mxu0 %v3897_v16  ;;  %3339 = vmatprep.mubr.f32.mxu1 %v4556_v48  ;;  %v2829_v48 = vld [vmem:[%s5194_s1 + $0x458] sm:$0xff] }
  0xb5   : > { %3563 = vmatprep.mubr.f32.mxu0 %v4559_v50  ;;  %3902 = vmatprep.subr.bf16.mxu0 %v3901_v28  ;;  %v3913_v50 = vpack.c.bf16 %v2829_v48, %v2828_v47 }
  0xb6   : > { %3340 = vmatmul.mubr.f32.gmra.mrb[4].mxu1 %v4568_v54  ;;  %3927 = vmatprep.subr.bf16.mxu1 %v3901_v28  ;;  %v2830_v54 = vld [vmem:[%s5194_s1 + $0x460] sm:$0xff] }
  0xb7   : > { %3564 = vmatmul.mubr.f32.gmra.mrb[4].mxu0 %v4577_v57  ;;  %3935 = vmatpush3.bf16.msra.mxu1 %v3901_v28  ;;  %v2831_v57 = vld [vmem:[%s5194_s1 + $0x468] sm:$0xff] }
  0xb8   : > { %3904 = vmatpush3.bf16.msra.mxu0 %v3901_v28  ;;  %3342 = vmatprep.mubr.f32.mxu1 %v4580_v58  ;;  %v3917_v58 = vpack.c.bf16 %v2831_v57, %v2830_v54 }
  0xb9   : > { %3566 = vmatprep.mubr.f32.mxu0 %v4583_v61  ;;  %3906 = vmatprep.subr.bf16.mxu0 %v3905_v37  ;;  %v2832_v61 = vld [vmem:[%s5194_s1 + $0x470] sm:$0xff] }
  0xba   : > { %3343 = vmatmul.mubr.f32.gmra.mrb[6].mxu1 %v4592_v1  ;;  %3928 = vmatprep.subr.bf16.mxu1 %v3905_v37  ;;  %v2833_v1 = vld [vmem:[%s5194_s1 + $0x478] sm:$0xff] }
  0xbb   : > { %3567 = vmatmul.mubr.f32.gmra.mrb[6].mxu0 %v4601_v4  ;;  %3936 = vmatpush3.bf16.msra.mxu1 %v3905_v37  ;;  %v3921_v4 = vpack.c.bf16 %v2833_v1, %v2832_v61 }
  0xbc   : > { %3908 = vmatpush3.bf16.msra.mxu0 %v3905_v37  ;;  %3345 = vmatprep.mubr.f32.mxu1 %v4604_v5  ;;  %v1973_v5 = vld [vmem:[#allocation2 + $0xd9] sm:$0xff] }
  0xbd   : > { %3569 = vmatprep.mubr.f32.mxu0 %v4607_v7  ;;  %3910 = vmatprep.subr.bf16.mxu0 %v3909_v44  ;;  %v1974_v7 = vld [vmem:[#allocation2 + $0xe1] sm:$0xff] }
  0xbe   : > { %3346 = vmatmul.mubr.f32.gmra.mrb[8].mxu1 %v4616_v11  ;;  %3929 = vmatprep.subr.bf16.mxu1 %v3909_v44  ;;  %v2199_v11 = vld [vmem:[#allocation2 + $0xda] sm:$0xff] }
  0xbf   : > { %3570 = vmatmul.mubr.f32.gmra.mrb[8].mxu0 %v4625_v14  ;;  %3937 = vmatpush3.bf16.msra.mxu1 %v3909_v44  ;;  %v2200_v14 = vld [vmem:[#allocation2 + $0xe2] sm:$0xff] }
  0xc0   : > { %3912 = vmatpush3.bf16.msra.mxu0 %v3909_v44  ;;  %3348 = vmatprep.mubr.f32.mxu1 %v4628_v15 }
  0xc1   : > { %3572 = vmatprep.mubr.f32.mxu0 %v4631_v17  ;;  %3914 = vmatprep.subr.bf16.mxu0 %v3913_v50 }
  0xc2   : > { %3349 = vmatmul.mubr.f32.gmra.mrb[10].mxu1 %v4640_v21  ;;  %3930 = vmatprep.subr.bf16.mxu1 %v3913_v50 }
  0xc3   : > { %3573 = vmatmul.mubr.f32.gmra.mrb[10].mxu0 %v4649_v24  ;;  %3938 = vmatpush3.bf16.msra.mxu1 %v3913_v50 }
  0xc4   : > { %3916 = vmatpush3.bf16.msra.mxu0 %v3913_v50  ;;  %3351 = vmatprep.mubr.f32.mxu1 %v4652_v25 }
  0xc5   : > { %3575 = vmatprep.mubr.f32.mxu0 %v4655_v29  ;;  %3918 = vmatprep.subr.bf16.mxu0 %v3917_v58 }
  0xc6   : > { %3352 = vmatmul.mubr.f32.gmra.mrb[12].mxu1 %v4664_v35  ;;  %3931 = vmatprep.subr.bf16.mxu1 %v3917_v58 }
  0xc7   : > { %3576 = vmatmul.mubr.f32.gmra.mrb[12].mxu0 %v4673_v41  ;;  %3939 = vmatpush3.bf16.msra.mxu1 %v3917_v58 }
  0xc8   : > { %3920 = vmatpush3.bf16.msra.mxu0 %v3917_v58  ;;  %3354 = vmatprep.mubr.f32.mxu1 %v4929_v36 }
  0xc9   : > { %3578 = vmatprep.mubr.f32.mxu0 %v1973_v5  ;;  %3922 = vmatprep.subr.bf16.mxu0 %v3921_v4 }
  0xca   : > { %3355 = vmatmul.mubr.f32.gmra.mrb[14].mxu1 %v4945_v51  ;;  %3932 = vmatprep.subr.bf16.mxu1 %v3921_v4 }
  0xcb   : > { %3579 = vmatmul.mubr.f32.gmra.mrb[14].mxu0 %v1974_v7  ;;  %3940 = vmatpush3.bf16.msra.mxu1 %v3921_v4 }
  0xcc   : > { %3924 = vmatpush3.bf16.msra.mxu0 %v3921_v4  ;;  %3613 = vmatprep.mubr.f32.mxu0 %v4695_v62 }
  0xcd   : > { %3625 = vmatprep.mubr.f32.mxu1 %v4775_v55 }
  0xce   : > { %3626 = vmatmul.mubr.f32.vlgmr.msra.gmra.mrb[16].mxu1 %v4791_v6 }
  0xcf   : > { %3614 = vmatmul.mubr.f32.vlgmr.msra.gmra.mrb[0].mxu0 %v4711_v8  ;;  %3628 = vmatprep.mubr.f32.mxu1 %v4795_v12 }
  0xd0   : > { %3616 = vmatprep.mubr.f32.mxu0 %v4715_v10 }
  0xd2   : > { %3629 = vmatmul.mubr.f32.gmra.mrb[18].mxu1 %v4811_v22 }
  0xd3   : > { %3617 = vmatmul.mubr.f32.gmra.mrb[2].mxu0 %v4731_v18  ;;  %3631 = vmatprep.mubr.f32.mxu1 %v4815_v26 }
  0xd4   : > { %3619 = vmatprep.mubr.f32.mxu0 %v4735_v20 }
  0xd6   : > { %3632 = vmatmul.mubr.f32.gmra.mrb[20].mxu1 %v4831_v46 }
  0xd7   : > { %3620 = vmatmul.mubr.f32.gmra.mrb[4].mxu0 %v4751_v33  ;;  %3634 = vmatprep.mubr.f32.mxu1 %v2199_v11 }
  0xd8   : > { %3622 = vmatprep.mubr.f32.mxu0 %v4755_v39 }
  0xda   : > { %3635 = vmatmul.mubr.f32.gmra.mrb[22].mxu1 %v2200_v14 }
  0xdb   : > { %3623 = vmatmul.mubr.f32.gmra.mrb[6].mxu0 %v4771_v52 }
 0x181   : > { %v3335_v15 = vpop.f32.mrb[0].mxu1 }
 0x182   : > { %v1169_v17 = vpop.f32.mrb[1].mxu1 }
 0x185   : > { %v3338_v21 = vpop.f32.mrb[2].mxu1 }
 0x186   : > { %v5044_v24 = vpop.f32.mrb[3].mxu1 }
 0x189   : > { %v5046_v25 = vpop.f32.mrb[4].mxu1 }
 0x18a   : > { %v5048_v29 = vpop.f32.mrb[5].mxu1 }
 0x18d   : > { %v5050_v35 = vpop.f32.mrb[6].mxu1 }
 0x18e   : > { %v5052_v41 = vpop.f32.mrb[7].mxu1 }
 0x191   : > { %v3347_v62 = vpop.f32.mrb[8].mxu1 }
 0x192   : > { %v3571_v8 = vpop.f32.mrb[8].mxu0  ;;  %v1209_v10 = vpop.f32.mrb[9].mxu1 }
 0x193   : > { %v3949_v18 = vadd.f32 %v3571_v8, %v3347_v62  ;;  %v2114_v20 = vpop.f32.mrb[9].mxu0 }
 0x194   : > { %v3951_v33 = vadd.f32 %v2114_v20, %v1209_v10 }
 0x195   : > { %v3350_v39 = vpop.f32.mrb[10].mxu1 }
 0x196   : > { %v3574_v52 = vpop.f32.mrb[10].mxu0  ;;  %v1219_v55 = vpop.f32.mrb[11].mxu1 }
 0x197   : > { %v3953_v6 = vadd.f32 %v3574_v52, %v3350_v39  ;;  %v2124_v12 = vpop.f32.mrb[11].mxu0 }
 0x198   : > { %v3955_v22 = vadd.f32 %v2124_v12, %v1219_v55 }
 0x199   : > { %v3353_v26 = vpop.f32.mrb[12].mxu1 }
 0x19a   : > { %v3577_v46 = vpop.f32.mrb[12].mxu0  ;;  %v1229_v23 = vpop.f32.mrb[13].mxu1 }
 0x19b   : > { %v5054_v31 = vadd.f32 %v3577_v46, %v3353_v26  ;;  %v2134_v32 = vpop.f32.mrb[13].mxu0 }
 0x19c   : > { %v5056_v36 = vadd.f32 %v2134_v32, %v1229_v23 }
 0x19d   : > { %v3356_v45 = vpop.f32.mrb[14].mxu1 }
 0x19e   : > { %v3580_v56 = vpop.f32.mrb[14].mxu0  ;;  %v1239_v42 = vpop.f32.mrb[15].mxu1 }
 0x19f   : > { %v5058_v43 = vadd.f32 %v3580_v56, %v3356_v45  ;;  %v2144_v49 = vpop.f32.mrb[15].mxu0 }
 0x1a0   : > { %v5060_v51 = vadd.f32 %v2144_v49, %v1239_v42 }
 0x1a1   : > { %v3627_v60 = vpop.f32.mrb[16].mxu1 }
 0x1a2   : > { %v3615_v63 = vpop.f32.mrb[0].mxu0  ;;  %v3950_v0 = vadd.f32 %v3949_v18, %v3627_v60  ;;  %v2340_v2 = vpop.f32.mrb[17].mxu1 }
 0x1a3   : > { %v3941_v3 = vadd.f32 %v3615_v63, %v3335_v15  ;;  %v2300_v13 = vpop.f32.mrb[1].mxu0  ;;  %v3952_v59 = vadd.f32 %v3951_v33, %v2340_v2 }
 0x1a4   : > { %v2443_v16 = vmul.f32 %v3950_v0, %v5065_v53  ;;  %v3942_v27 = vadd.f32 %v2300_v13, %v1169_v17 }
 0x1a5   : > { %v2435_v19 = vmul.f32 %v3941_v3, %v5065_v53  ;;  %v2442_v28 = vmul.f32 %v3952_v59, %v5065_v53  ;;  %v3630_v30 = vpop.f32.mrb[18].mxu1 }
 0x1a6   : > { %v2466_v34 = vadd.f32 %v5070_v9, %v2443_v16  ;;  %v2434_v37 = vmul.f32 %v3942_v27, %v5065_v53  ;;  %v3618_v38 = vpop.f32.mrb[2].mxu0  ;;  %v3954_v40 = vadd.f32 %v3953_v6, %v3630_v30  ;;  %v2350_v44 = vpop.f32.mrb[19].mxu1 }
 0x1a7   : > { %v2458_v47 = vadd.f32 %v5070_v9, %v2435_v19  ;;  %v2465_v48 = vadd.f32 %v5070_v9, %v2442_v28  ;;  %v3943_v50 = vadd.f32 %v3618_v38, %v3338_v21  ;;  %v2310_v54 = vpop.f32.mrb[3].mxu0  ;;  %v3956_v57 = vadd.f32 %v3955_v22, %v2350_v44 }
 0x1a8   : > { %vm2482_vm0 = vcmp.ge.f32.partialorder %v2466_v34, 0.0  ;;  %v2498_v58 = vmul.f32 0.1, %v2466_v34  ;;  %v2457_v61 = vadd.f32 %v5070_v9, %v2434_v37  ;;  %v2445_v1 = vmul.f32 %v3954_v40, %v5065_v53 }
 0x1a9   : > { %vm2474_vm1 = vcmp.ge.f32.partialorder %v2458_v47, 0.0  ;;  %v2490_v4 = vmul.f32 0.1, %v2458_v47  ;;  %vm2481_vm2 = vcmp.ge.f32.partialorder %v2465_v48, 0.0  ;;  %v2497_v5 = vmul.f32 0.1, %v2465_v48 }
 0x1aa   : > { %v2514_v7 = vsel %vm2482_vm0, %v2466_v34, %v2498_v58  ;;  %vm2473_vm3 = vcmp.ge.f32.partialorder %v2457_v61, 0.0  ;;  %v2489_v11 = vmul.f32 0.1, %v2457_v61  ;;  %v2437_v14 = vmul.f32 %v3943_v50, %v5065_v53  ;;  %v3621_v15 = vpop.f32.mrb[4].mxu0  ;;  %v3633_v17 = vpop.f32.mrb[20].mxu1 }
 0x1ab   : > { %v2506_v21 = vsel %vm2474_vm1, %v2458_v47, %v2490_v4  ;;  %2530 = vst [vmem:[%s4382_s24 + $0x48] sm:$0xff] %v2514_v7  ;;  %v2513_v62 = vsel %vm2481_vm2, %v2465_v48, %v2497_v5  ;;  %v2468_v8 = vadd.f32 %v5070_v9, %v2445_v1  ;;  %v3944_v10 = vadd.f32 %v2310_v54, %v5044_v24  ;;  %v2320_v18 = vpop.f32.mrb[5].mxu0  ;;  %v2360_v20 = vpop.f32.mrb[21].mxu1 }
 0x1ac   : > { %2522 = vst [vmem:[%s4382_s24 + $0x8] sm:$0xff] %v2506_v21  ;;  %v2505_v33 = vsel %vm2473_vm3, %v2457_v61, %v2489_v11  ;;  %2529 = vst [vmem:[%s4382_s24 + $0x40] sm:$0xff] %v2513_v62  ;;  %v2460_v39 = vadd.f32 %v5070_v9, %v2437_v14  ;;  %v2444_v52 = vmul.f32 %v3956_v57, %v5065_v53 }
 0x1ad   : > { %v3945_v55 = vadd.f32 %v3621_v15, %v5046_v25  ;;  %2521 = vst [vmem:[%s4382_s24] sm:$0xff] %v2505_v33  ;;  %vm2484_vm4 = vcmp.ge.f32.partialorder %v2468_v8, 0.0  ;;  %v2500_v6 = vmul.f32 0.1, %v2468_v8  ;;  %v2436_v12 = vmul.f32 %v3944_v10, %v5065_v53  ;;  %v3636_v24 = vpop.f32.mrb[22].mxu1 }
 0x1ae   : > { %v3958_v22 = vadd.f32 %v5054_v31, %v3633_v17  ;;  %vm2476_vm5 = vcmp.ge.f32.partialorder %v2460_v39, 0.0  ;;  %v2492_v26 = vmul.f32 0.1, %v2460_v39  ;;  %v2467_v46 = vadd.f32 %v5070_v9, %v2444_v52  ;;  %v3624_v32 = vpop.f32.mrb[6].mxu0  ;;  %v2370_v45 = vpop.f32.mrb[23].mxu1 }
 0x1af   : > { %v2439_v23 = vmul.f32 %v3945_v55, %v5065_v53  ;;  %v2516_v56 = vsel %vm2484_vm4, %v2468_v8, %v2500_v6  ;;  %v2459_v25 = vadd.f32 %v5070_v9, %v2436_v12  ;;  %v3946_v49 = vadd.f32 %v2320_v18, %v5048_v29  ;;  %v2330_v60 = vpop.f32.mrb[7].mxu0 }
 0x1b0   : > { %v2447_v42 = vmul.f32 %v3958_v22, %v5065_v53  ;;  %v2508_v31 = vsel %vm2476_vm5, %v2460_v39, %v2492_v26  ;;  %2532 = vst [vmem:[%s4382_s24 + $0x58] sm:$0xff] %v2516_v56  ;;  %vm2483_vm6 = vcmp.ge.f32.partialorder %v2467_v46, 0.0  ;;  %v2499_v63 = vmul.f32 0.1, %v2467_v46 }
 0x1b1   : > { %v2462_v0 = vadd.f32 %v5070_v9, %v2439_v23  ;;  %2524 = vst [vmem:[%s4382_s24 + $0x18] sm:$0xff] %v2508_v31  ;;  %vm2475_vm7 = vcmp.ge.f32.partialorder %v2459_v25, 0.0  ;;  %v2491_v2 = vmul.f32 0.1, %v2459_v25  ;;  %v2438_v13 = vmul.f32 %v3946_v49, %v5065_v53 }
 0x1b2   : > { %v2470_v3 = vadd.f32 %v5070_v9, %v2447_v42  ;;  %v2515_v59 = vsel %vm2483_vm6, %v2467_v46, %v2499_v63  ;;  %v3960_v16 = vadd.f32 %v5056_v36, %v2360_v20  ;;  %v3947_v37 = vadd.f32 %v3624_v32, %v5050_v35 }
 0x1b3   : > { %vm2478_vm8 = vcmp.ge.f32.partialorder %v2462_v0, 0.0  ;;  %v2494_v29 = vmul.f32 0.1, %v2462_v0  ;;  %v2507_v27 = vsel %vm2475_vm7, %v2459_v25, %v2491_v2  ;;  %2531 = vst [vmem:[%s4382_s24 + $0x50] sm:$0xff] %v2515_v59  ;;  %v2461_v28 = vadd.f32 %v5070_v9, %v2438_v13 }
 0x1b4   : > { %vm2486_vm9 = vcmp.ge.f32.partialorder %v2470_v3, 0.0  ;;  %v2502_v19 = vmul.f32 0.1, %v2470_v3  ;;  %2523 = vst [vmem:[%s4382_s24 + $0x10] sm:$0xff] %v2507_v27  ;;  %v2446_v34 = vmul.f32 %v3960_v16, %v5065_v53  ;;  %v3962_v38 = vadd.f32 %v5058_v43, %v3636_v24 }
 0x1b5   : > { %v2510_v30 = vsel %vm2478_vm8, %v2462_v0, %v2494_v29  ;;  %vm2477_vm10 = vcmp.ge.f32.partialorder %v2461_v28, 0.0  ;;  %v2493_v40 = vmul.f32 0.1, %v2461_v28  ;;  %v3948_v44 = vadd.f32 %v2330_v60, %v5052_v41 }
 0x1b6   : > { %2526 = vst [vmem:[%s4382_s24 + $0x28] sm:$0xff] %v2510_v30  ;;  %v2518_v36 = vsel %vm2486_vm9, %v2470_v3, %v2502_v19  ;;  %v2469_v47 = vadd.f32 %v5070_v9, %v2446_v34  ;;  %v2441_v48 = vmul.f32 %v3947_v37, %v5065_v53  ;;  %v2449_v50 = vmul.f32 %v3962_v38, %v5065_v53 }
 0x1b7   : > { %2534 = vst [vmem:[%s4382_s24 + $0x68] sm:$0xff] %v2518_v36  ;;  %v3964_v35 = vadd.f32 %v5060_v51, %v2370_v45  ;;  %v2509_v43 = vsel %vm2477_vm10, %v2461_v28, %v2493_v40  ;;  %v2440_v54 = vmul.f32 %v3948_v44, %v5065_v53 }
 0x1b8   : > { %2525 = vst [vmem:[%s4382_s24 + $0x20] sm:$0xff] %v2509_v43  ;;  %vm2485_vm11 = vcmp.ge.f32.partialorder %v2469_v47, 0.0  ;;  %v2501_v57 = vmul.f32 0.1, %v2469_v47  ;;  %v2464_v41 = vadd.f32 %v5070_v9, %v2441_v48  ;;  %v2472_v58 = vadd.f32 %v5070_v9, %v2449_v50 }
 0x1b9   : > { %v2463_v61 = vadd.f32 %v5070_v9, %v2440_v54  ;;  %v2448_v1 = vmul.f32 %v3964_v35, %v5065_v53 }
 0x1ba   : > { %v2517_v4 = vsel %vm2485_vm11, %v2469_v47, %v2501_v57  ;;  %vm2480_vm12 = vcmp.ge.f32.partialorder %v2464_v41, 0.0  ;;  %v2496_v51 = vmul.f32 0.1, %v2464_v41  ;;  %vm2488_vm13 = vcmp.ge.f32.partialorder %v2472_v58, 0.0 }
 0x1bb   : > { %2533 = vst [vmem:[%s4382_s24 + $0x60] sm:$0xff] %v2517_v4  ;;  %v2504_v5 = vmul.f32 0.1, %v2472_v58  ;;  %vm2479_vm14 = vcmp.ge.f32.partialorder %v2463_v61, 0.0  ;;  %v2495_v7 = vmul.f32 0.1, %v2463_v61  ;;  %v2471_v11 = vadd.f32 %v5070_v9, %v2448_v1 }
 0x1bc   : > { %v2512_v14 = vsel %vm2480_vm12, %v2464_v41, %v2496_v51 }
 0x1bd   : > { %2528 = vst [vmem:[%s4382_s24 + $0x38] sm:$0xff] %v2512_v14  ;;  %v2520_v53 = vsel %vm2488_vm13, %v2472_v58, %v2504_v5  ;;  %v2511_v15 = vsel %vm2479_vm14, %v2463_v61, %v2495_v7  ;;  %vm2487_vm15 = vcmp.ge.f32.partialorder %v2471_v11, 0.0  ;;  %v2503_v17 = vmul.f32 0.1, %v2471_v11 }
 0x1be   : > { %2536 = vst [vmem:[%s4382_s24 + $0x78] sm:$0xff] %v2520_v53  ;;  %2527 = vst [vmem:[%s4382_s24 + $0x30] sm:$0xff] %v2511_v15 }
 0x1bf   : > { %v2519_v9 = vsel %vm2487_vm15, %v2471_v11, %v2503_v17 }
 0x1c0   : > { %2535 = vst [vmem:[%s4382_s24 + $0x70] sm:$0xff] %v2519_v9 }
 0x1c1   : > { %4155 = shalt.err (!%p4152_p5)
}
 0x1c2   : > { %s4156_s8 = scalar_lea.hbm %s5132_s27, 2048  ;;  %s4160_s13 = scalar_lea.hbm %s5197_s4, 8192 }
 0x1c3   : > { %p4157_p6 = scmp.ne.s32.totalorder %s5132_s27, %s4156_s8  ;;  %p4161_p10 = scmp.lt.u32.totalorder %s5132_s27, %s5197_s4 }
 0x1c4   : > { %p4162_p11 = scmp.lt.u32.totalorder %s4160_s13, %s4156_s8  ;;  %p4164_p13 = scmp.lt.u32.totalorder %s4156_s8, %s5132_s27 }
 0x1c5   : > { %p4158_p7 = pnand %p4157_p6, %p4319_p3 }
 0x1c6   : > { %p4163_p12 = por %p4162_p11, %p4161_p10 }
 0x1c7   : > { %p4159_p9 = pneg %p4158_p7 }
 0x1c8   : > { %p4165_p0 = por %p4164_p13, %p4163_p12 }
 0x1ca   : > { %p4166_p1 = pnand %p4165_p0, %p4159_p9 }
 0x1cc   : > { %4169 = shalt.err (!%p4166_p1)
}
 0x1cd   : > { %s4241_s14 = smov 128   ;;  %s4242_s23 = smov 8  }
 0x1ce   : > { %4069 = dma.vmem_to_hbm [thread:$0]  (%p4319_p3), %s5134_s10, 2048, %s5132_s27, %s5141_s30, %s4241_s14, %s4241_s14, %s4242_s23  }
 0x1cf PF: > { %p4075_p2 = scmp.ge.s32.totalorder %s4238_s22, 2  ;;  %s2570_s5 = sand.u32 1, %s4210_s15  }
 0x1d0   : > { %s2571_s6 = scalar_lea.sflag [#allocation6], %s2570_s5 }
 0x1d1   : > { %p4072_p4 = pnand %p4075_p2, %p4328_p8 }
 0x1d3   : > { %4205 = dma.done.wait (!%p4072_p4), %s2571_s6, 2048  }
 0x1d4   : > { %4207 = vsyncadd (!%p4072_p4), %s2571_s6, 4294965248  ;;  %s17_s22 = sadd.s32 1, %s4238_s22   ;;  %s5200_s15 = smov %s4214_s16 }
 0x1d5   : > { %p14_p5 = scmp.ge.s32.totalorder %s17_s22, 6   ;;  %s5201_s16 = smov %s4218_s17 }
 0x1d6   : > { %s5202_s17 = smov %s4337_s7  ;;  %s5203_s18 = smov %s4230_s20 }
 0x1d7   : > { %s5204_s19 = smov %s4234_s21  ;;  %s5205_s20 = smov %s5208_s25 }
 0x1d8   : > { %s5206_s21 = smov %s5212_s26  ;;  %16 = sbr.rel (!%p14_p5) target bundleno = 5 (0x5), region = 139 }
 0x1df   :  { %2576 = vsyncpa [#allocation6], 1 }
 0x1e0   :  { %2578 = vsyncpa [#allocation6 + $0x1], 1 }
 0x1e1   :  { %2579 = vsyncmov [#allocation4] }
 0x1e4   :  { %s2580_s28 = vpop.sfrf %2579 }
 0x1e5   :  { %p2843_p3 = scmp.ne.s32.totalorder %s2580_s28, 0 }
 0x1e7   :  { %2584 = shalt.err (%p2843_p3)  }

</bundles_post_ra>
